<compile_context>
chip_gen: v7x
topology: tpu7x:2x2x1
jax: 0.10.0
libtpu: 0.0.40
codegen_flags: <defaults>
</compile_context>

<pallas_src>
import functools
import math

import jax
import jax.numpy as jnp
from jax.experimental import pallas as pl
from jax.experimental.pallas import tpu as pltpu


# ------------------------------ tiling helper -------------------------------

def _pick_tile(dim, candidates=(512, 256, 128)):
    """Largest candidate (multiple of 128) dividing `dim`, else the full dim."""
    for c in candidates:
        if dim % c == 0:
            return c
    return dim


# ------------------------------ Pallas kernels ------------------------------

def _attn_sublayer_kernel(*refs, num_heads, scale, use_mask):
    """Fused attention sublayer for one batch element.

    out = LayerNorm(x_q + MHA(x_q, x_kv) @ Wo + bo)

    Block shapes: x_q (1,T,D) f32, x_kv (1,S,D) f32, wq (D,D) bf16, bq (1,D),
    wkv (D,2D) bf16, bkv (1,2D), wo (D,D) bf16, bo (1,D), gamma (1,D),
    beta (1,D), [mask (T,S) f32], out (1,T,D) f32.
    """
    if use_mask:
        (xq_ref, xkv_ref, wq_ref, bq_ref, wkv_ref, bkv_ref,
         wo_ref, bo_ref, g_ref, beta_ref, m_ref, o_ref) = refs
    else:
        (xq_ref, xkv_ref, wq_ref, bq_ref, wkv_ref, bkv_ref,
         wo_ref, bo_ref, g_ref, beta_ref, o_ref) = refs
        m_ref = None

    xq = xq_ref[0]                        # (T, D) f32 -- also the residual
    xkv = xkv_ref[0]                      # (S, D) f32
    d_model = xq.shape[-1]
    dh = d_model // num_heads

    # fused projections on the MXU: bf16 inputs, f32 accumulation
    # softmax scale folded into Q (cheaper than scaling every score matrix)
    q = (jnp.dot(xq.astype(jnp.bfloat16), wq_ref[...],
                 preferred_element_type=jnp.float32) + bq_ref[...]) * scale
    kv = jnp.dot(xkv.astype(jnp.bfloat16), wkv_ref[...],
                 preferred_element_type=jnp.float32) + bkv_ref[...]   # (S, 2D)
    k = kv[:, :d_model]
    v = kv[:, d_model:]

    outs = []
    for h in range(num_heads):            # static (unrolled) loop over heads
        qh = q[:, h * dh:(h + 1) * dh].astype(jnp.bfloat16)
        kh = k[:, h * dh:(h + 1) * dh].astype(jnp.bfloat16)
        vh = v[:, h * dh:(h + 1) * dh].astype(jnp.bfloat16)
        s = jnp.dot(qh, kh.T, preferred_element_type=jnp.float32)     # (T, S)
        if use_mask:
            s = s + m_ref[...]            # additive (T,S) mask, shared over B
        s = s - jnp.max(s, axis=-1, keepdims=True)
        p = jnp.exp(s)
        p = p * pl.reciprocal(jnp.sum(p, axis=-1, keepdims=True), approx=True)
        outs.append(jnp.dot(p.astype(jnp.bfloat16), vh,
                            preferred_element_type=jnp.float32))
    ctx = jnp.concatenate(outs, axis=-1)  # (T, D) lane-dense

    # output projection + residual + LayerNorm (post-LN)
    y = jnp.dot(ctx.astype(jnp.bfloat16), wo_ref[...],
                preferred_element_type=jnp.float32) + bo_ref[...]
    z = xq + y
    mu = jnp.mean(z, axis=-1, keepdims=True)
    var = jnp.mean((z - mu) ** 2, axis=-1, keepdims=True)
    o_ref[0] = (z - mu) * jax.lax.rsqrt(var + 1e-5) * g_ref[...] + beta_ref[...]


def _ffn_add_ln_kernel(x_ref, w1_ref, b1_ref, w2_ref, b2_ref, g_ref, beta_ref,
                       o_ref):
    """out = LayerNorm(x + relu(x @ W1 + b1) @ W2 + b2)."""
    x = x_ref[...]
    h = jnp.dot(x.astype(jnp.bfloat16), w1_ref[...],
                preferred_element_type=jnp.float32) + b1_ref[...]
    h = jnp.maximum(h, 0.0)
    y = jnp.dot(h.astype(jnp.bfloat16), w2_ref[...],
                preferred_element_type=jnp.float32) + b2_ref[...]
    z = x + y
    mu = jnp.mean(z, axis=-1, keepdims=True)
    var = jnp.mean((z - mu) ** 2, axis=-1, keepdims=True)
    o_ref[...] = (z - mu) * jax.lax.rsqrt(var + 1e-5) * g_ref[...] + beta_ref[...]


def _linear_bias_kernel(x_ref, w_ref, b_ref, o_ref, acc_ref):
    """Tiled o = x @ w + b with K-axis accumulation in an f32 VMEM scratch."""
    @pl.when(pl.program_id(2) == 0)
    def _():
        acc_ref[...] = jnp.zeros_like(acc_ref)

    acc_ref[...] += jnp.dot(x_ref[...].astype(jnp.bfloat16), w_ref[...],
                            preferred_element_type=jnp.float32)

    @pl.when(pl.program_id(2) == pl.num_programs(2) - 1)
    def _():
        o_ref[...] = acc_ref[...] + b_ref[...]


# ------------------------------ kernel wrappers ------------------------------

def attn_sublayer(x_q, x_kv, mask, p, gamma, beta, num_heads):
    """One fused attention sublayer: returns LN(x_q + MHA(x_q, x_kv)Wo + bo)."""
    B, T, D = x_q.shape
    S = x_kv.shape[1]
    scale = 1.0 / math.sqrt(D // num_heads)
    use_mask = mask is not None

    kern = functools.partial(_attn_sublayer_kernel, num_heads=num_heads,
                             scale=scale, use_mask=use_mask)

    in_specs = [
        pl.BlockSpec((1, T, D), lambda b: (b, 0, 0)),      # x_q (residual)
        pl.BlockSpec((1, S, D), lambda b: (b, 0, 0)),      # x_kv
        pl.BlockSpec((D, D), lambda b: (0, 0)),            # wq (bf16)
        pl.BlockSpec((1, D), lambda b: (0, 0)),            # bq
        pl.BlockSpec((D, 2 * D), lambda b: (0, 0)),        # wkv (bf16)
        pl.BlockSpec((1, 2 * D), lambda b: (0, 0)),        # bkv
        pl.BlockSpec((D, D), lambda b: (0, 0)),            # wo (bf16)
        pl.BlockSpec((1, D), lambda b: (0, 0)),            # bo
        pl.BlockSpec((1, D), lambda b: (0, 0)),            # ln gamma
        pl.BlockSpec((1, D), lambda b: (0, 0)),            # ln beta
    ]
    args = [x_q, x_kv, p["wq"], p["bq"].reshape(1, D),
            p["wkv"], p["bkv"].reshape(1, 2 * D),
            p["wo"], p["bo"].reshape(1, D),
            gamma.reshape(1, D), beta.reshape(1, D)]
    if use_mask:
        # one (T,S) additive mask shared across the whole batch grid
        in_specs.append(pl.BlockSpec((T, S), lambda b: (0, 0)))
        args.append(mask.astype(jnp.float32))

    return pl.pallas_call(
        kern,
        out_shape=jax.ShapeDtypeStruct((B, T, D), jnp.float32),
        grid=(B,),
        in_specs=in_specs,
        out_specs=pl.BlockSpec((1, T, D), lambda b: (b, 0, 0)),
        compiler_params=pltpu.CompilerParams(dimension_semantics=("parallel",)),
    )(*args)


def ffn_add_ln(x2d, w1, b1, w2, b2, g, beta):
    M, D = x2d.shape
    dff = w1.shape[1]
    # smaller row tile: the (tm, d_ff) relu intermediate dominates VMEM (v7x).
    tm = _pick_tile(M, (256, 128))
    return pl.pallas_call(
        _ffn_add_ln_kernel,
        out_shape=jax.ShapeDtypeStruct((M, D), jnp.float32),
        grid=(M // tm,),
        in_specs=[
            pl.BlockSpec((tm, D), lambda i: (i, 0)),
            pl.BlockSpec((D, dff), lambda i: (0, 0)),
            pl.BlockSpec((1, dff), lambda i: (0, 0)),
            pl.BlockSpec((dff, D), lambda i: (0, 0)),
            pl.BlockSpec((1, D), lambda i: (0, 0)),
            pl.BlockSpec((1, D), lambda i: (0, 0)),
            pl.BlockSpec((1, D), lambda i: (0, 0)),
        ],
        out_specs=pl.BlockSpec((tm, D), lambda i: (i, 0)),
        compiler_params=pltpu.CompilerParams(dimension_semantics=("parallel",)),
    )(x2d, w1, b1.reshape(1, dff), w2, b2.reshape(1, D), g.reshape(1, D),
      beta.reshape(1, D))


def linear_bias(x2d, w, b):
    """Tiled (M/tm, N/tn, K/tk) matmul + bias (used for the vocab projection)."""
    M, K = x2d.shape
    N = w.shape[1]
    tm, tn, tk = _pick_tile(M), _pick_tile(N), _pick_tile(K)
    return pl.pallas_call(
        _linear_bias_kernel,
        out_shape=jax.ShapeDtypeStruct((M, N), jnp.float32),
        grid=(M // tm, N // tn, K // tk),              # K last: accumulation axis
        in_specs=[
            pl.BlockSpec((tm, tk), lambda i, j, k: (i, k)),
            pl.BlockSpec((tk, tn), lambda i, j, k: (k, j)),
            pl.BlockSpec((1, tn), lambda i, j, k: (0, j)),
        ],
        out_specs=pl.BlockSpec((tm, tn), lambda i, j, k: (i, j)),
        scratch_shapes=[pltpu.VMEM((tm, tn), jnp.float32)],
        compiler_params=pltpu.CompilerParams(
            dimension_semantics=("parallel", "parallel", "arbitrary")),
    )(x2d, w, b.reshape(1, N))


# ------------------------------- model pieces --------------------------------

def sinusoidal_pos_enc(max_len, d_model):
    pos = jnp.arange(max_len, dtype=jnp.float32)[:, None]
    i = jnp.arange(d_model // 2, dtype=jnp.float32)[None, :]
    angle = pos / jnp.power(10000.0, 2.0 * i / d_model)
    pe = jnp.zeros((max_len, d_model), jnp.float32)
    pe = pe.at[:, 0::2].set(jnp.sin(angle))
    pe = pe.at[:, 1::2].set(jnp.cos(angle))
    return pe


def init_params(key, num_layers, d_model, num_heads, d_ff, vocab_size, max_len):
    def dense(k, fan_in, fan_out):
        # matmul weights stored bf16 (MXU-native); biases/LN params stay f32.
        w = 0.02 * jax.random.normal(k, (fan_in, fan_out), jnp.float32)
        return w.astype(jnp.bfloat16)

    keys = jax.random.split(key, 2 + num_layers)
    params = {
        "embed": 0.02 * jax.random.normal(keys[0], (vocab_size, d_model),
                                          jnp.float32),
        "pos_enc": sinusoidal_pos_enc(max_len, d_model),
        "out_w": dense(keys[1], d_model, vocab_size),
        "out_b": jnp.zeros((vocab_size,), jnp.float32),
        "layers": [],
    }
    for li in range(num_layers):
        lk = jax.random.split(keys[2 + li], 10)

        def attn_block(ks):
            return {
                "wq": dense(ks[0], d_model, d_model),
                "bq": jnp.zeros((d_model,), jnp.float32),
                # K and V projections fused into one (D, 2D) matmul
                "wkv": jnp.concatenate([dense(ks[1], d_model, d_model),
                                        dense(ks[2], d_model, d_model)], axis=1),
                "bkv": jnp.zeros((2 * d_model,), jnp.float32),
                "wo": dense(ks[3], d_model, d_model),
                "bo": jnp.zeros((d_model,), jnp.float32),
            }

        params["layers"].append({
            "self_attn": attn_block(lk[0:4]),
            "cross_attn": attn_block(lk[4:8]),
            "ffn_w1": dense(lk[8], d_model, d_ff),
            "ffn_b1": jnp.zeros((d_ff,), jnp.float32),
            "ffn_w2": dense(lk[9], d_ff, d_model),
            "ffn_b2": jnp.zeros((d_model,), jnp.float32),
            "ln1_g": jnp.ones((d_model,), jnp.float32),
            "ln1_b": jnp.zeros((d_model,), jnp.float32),
            "ln2_g": jnp.ones((d_model,), jnp.float32),
            "ln2_b": jnp.zeros((d_model,), jnp.float32),
            "ln3_g": jnp.ones((d_model,), jnp.float32),
            "ln3_b": jnp.zeros((d_model,), jnp.float32),
        })
    return params


def decoder_forward(params, tgt_ids, src, src_mask=None, tgt_mask=None, *,
                    num_heads):
    # TODO(synk): dropout omitted (eval-mode forward; reference module is an
    # empty skeleton, so no dropout probability exists).
    B, T = tgt_ids.shape
    d_model = params["embed"].shape[1]
    vocab = params["out_w"].shape[1]

    # token embedding + sinusoidal positions (gather left in XLA)
    x = jnp.take(params["embed"], tgt_ids, axis=0) * math.sqrt(d_model)
    x = x + params["pos_enc"][:T][None, :, :]

    for layer in params["layers"]:
        # masked self-attention sublayer (fully fused, incl. residual + LN)
        x = attn_sublayer(x, x, tgt_mask, layer["self_attn"],
                          layer["ln1_g"], layer["ln1_b"], num_heads)
        # cross-attention sublayer over encoder memory
        x = attn_sublayer(x, src, src_mask, layer["cross_attn"],
                          layer["ln2_g"], layer["ln2_b"], num_heads)
        # position-wise FFN sublayer (fused, incl. residual + LN)
        x = ffn_add_ln(x.reshape(B * T, d_model),
                       layer["ffn_w1"], layer["ffn_b1"],
                       layer["ffn_w2"], layer["ffn_b2"],
                       layer["ln3_g"], layer["ln3_b"]).reshape(B, T, d_model)

    logits = linear_bias(x.reshape(B * T, d_model), params["out_w"],
                         params["out_b"])
    return logits.reshape(B, T, vocab)


# ----------------------------------- main ------------------------------------

if __name__ == "__main__":
    num_layers, d_model, num_heads, d_ff = 2, 32, 4, 64
    vocab_size, max_len = 50, 16
    B, T, S = 2, 8, 8

    params = init_params(jax.random.PRNGKey(0), num_layers, d_model, num_heads,
                         d_ff, vocab_size, max_len)

    k_tgt, k_src = jax.random.split(jax.random.PRNGKey(0))
    tgt = jax.random.randint(k_tgt, (B, T), 0, vocab_size)          # token ids
    src = jax.random.normal(k_src, (B, S, d_model), jnp.float32)    # encoder memory

    # causal (look-ahead) additive mask for target self-attention
    tgt_mask = jnp.where(jnp.tril(jnp.ones((T, T), bool)), 0.0,
                         -1e9).astype(jnp.float32)

    fwd = jax.jit(functools.partial(decoder_forward, num_heads=num_heads))
    logits = fwd(params, tgt, src, None, tgt_mask)
    jax.block_until_ready(logits)

    assert logits.shape == (B, T, vocab_size)
    assert bool(jnp.all(jnp.isfinite(logits)))
    print("KERNEL_OK")
</pallas_src>

<mosaic_0001>
module attributes {stable_mosaic.version = 11 : i64} {
  func.func @_attn_sublayer_kernel(%arg0: i32, %arg1: memref<1x8x32xf32, #tpu.memory_space<vmem>>, %arg2: memref<1x8x32xf32, #tpu.memory_space<vmem>>, %arg3: memref<32x32xbf16, #tpu.memory_space<vmem>>, %arg4: memref<1x32xf32, #tpu.memory_space<vmem>>, %arg5: memref<32x64xbf16, #tpu.memory_space<vmem>>, %arg6: memref<1x64xf32, #tpu.memory_space<vmem>>, %arg7: memref<32x32xbf16, #tpu.memory_space<vmem>>, %arg8: memref<1x32xf32, #tpu.memory_space<vmem>>, %arg9: memref<1x32xf32, #tpu.memory_space<vmem>>, %arg10: memref<1x32xf32, #tpu.memory_space<vmem>>, %arg11: memref<8x8xf32, #tpu.memory_space<vmem>>, %arg12: memref<1x8x32xf32, #tpu.memory_space<vmem>>) attributes {dimension_semantics = [#tpu.dimension_semantics<parallel>], iteration_bounds = array<i64: 2>, scalar_prefetch = 0 : i64, scratch_operands = 0 : i64, tpu.core_type = #tpu.core_type<tc>, window_params = [{transform_indices = @transform_0, window_bounds = array<i64: 1, 8, 32>}, {transform_indices = @transform_1, window_bounds = array<i64: 1, 8, 32>}, {pipeline_mode = #tpu.pipeline_mode<synchronous>, transform_indices = @transform_2, window_bounds = array<i64: 32, 32>}, {pipeline_mode = #tpu.pipeline_mode<synchronous>, transform_indices = @transform_3, window_bounds = array<i64: 1, 32>}, {pipeline_mode = #tpu.pipeline_mode<synchronous>, transform_indices = @transform_4, window_bounds = array<i64: 32, 64>}, {pipeline_mode = #tpu.pipeline_mode<synchronous>, transform_indices = @transform_5, window_bounds = array<i64: 1, 64>}, {pipeline_mode = #tpu.pipeline_mode<synchronous>, transform_indices = @transform_6, window_bounds = array<i64: 32, 32>}, {pipeline_mode = #tpu.pipeline_mode<synchronous>, transform_indices = @transform_7, window_bounds = array<i64: 1, 32>}, {pipeline_mode = #tpu.pipeline_mode<synchronous>, transform_indices = @transform_8, window_bounds = array<i64: 1, 32>}, {pipeline_mode = #tpu.pipeline_mode<synchronous>, transform_indices = @transform_9, window_bounds = array<i64: 1, 32>}, {pipeline_mode = #tpu.pipeline_mode<synchronous>, transform_indices = @transform_10, window_bounds = array<i64: 8, 8>}, {transform_indices = @transform_11, window_bounds = array<i64: 1, 8, 32>}]} {
    %c0 = arith.constant 0 : index
    %c0_0 = arith.constant 0 : index
    %c0_1 = arith.constant 0 : index
    %0 = vector.load %arg1[%c0, %c0_0, %c0_1] : memref<1x8x32xf32, #tpu.memory_space<vmem>>, vector<1x8x32xf32>
    %1 = vector.shape_cast %0 : vector<1x8x32xf32> to vector<8x32xf32>
    %c0_2 = arith.constant 0 : index
    %c0_3 = arith.constant 0 : index
    %c0_4 = arith.constant 0 : index
    %2 = vector.load %arg2[%c0_2, %c0_3, %c0_4] : memref<1x8x32xf32, #tpu.memory_space<vmem>>, vector<1x8x32xf32>
    %3 = vector.shape_cast %2 : vector<1x8x32xf32> to vector<8x32xf32>
    %4 = arith.truncf %1 : vector<8x32xf32> to vector<8x32xbf16>
    %c0_5 = arith.constant 0 : index
    %c0_6 = arith.constant 0 : index
    %5 = vector.load %arg3[%c0_5, %c0_6] : memref<32x32xbf16, #tpu.memory_space<vmem>>, vector<32x32xbf16>
    %cst = arith.constant dense<0.000000e+00> : vector<8x32xf32>
    %6 = tpu.matmul %4, %5, %cst {dimension_numbers = #tpu.dot_dimension_numbers<[1], [0], [0], [1], [0, 0, 1, 1], [], []>} : vector<8x32xbf16>, vector<32x32xbf16>, vector<8x32xf32> -> vector<8x32xf32>
    %c0_7 = arith.constant 0 : index
    %c0_8 = arith.constant 0 : index
    %7 = vector.load %arg4[%c0_7, %c0_8] : memref<1x32xf32, #tpu.memory_space<vmem>>, vector<1x32xf32>
    %8 = vector.broadcast %7 : vector<1x32xf32> to vector<8x32xf32>
    %9 = arith.addf %6, %8 : vector<8x32xf32>
    %cst_9 = arith.constant 0.353553385 : f32
    %10 = vector.broadcast %cst_9 : f32 to vector<8x32xf32>
    %11 = arith.mulf %9, %10 : vector<8x32xf32>
    %12 = arith.truncf %3 : vector<8x32xf32> to vector<8x32xbf16>
    %c0_10 = arith.constant 0 : index
    %c0_11 = arith.constant 0 : index
    %13 = vector.load %arg5[%c0_10, %c0_11] : memref<32x64xbf16, #tpu.memory_space<vmem>>, vector<32x64xbf16>
    %cst_12 = arith.constant dense<0.000000e+00> : vector<8x64xf32>
    %14 = tpu.matmul %12, %13, %cst_12 {dimension_numbers = #tpu.dot_dimension_numbers<[1], [0], [0], [1], [0, 0, 1, 1], [], []>} : vector<8x32xbf16>, vector<32x64xbf16>, vector<8x64xf32> -> vector<8x64xf32>
    %c0_13 = arith.constant 0 : index
    %c0_14 = arith.constant 0 : index
    %15 = vector.load %arg6[%c0_13, %c0_14] : memref<1x64xf32, #tpu.memory_space<vmem>>, vector<1x64xf32>
    %16 = vector.broadcast %15 : vector<1x64xf32> to vector<8x64xf32>
    %17 = arith.addf %14, %16 : vector<8x64xf32>
    %18 = vector.extract_strided_slice %17 {offsets = [0, 0], sizes = [8, 32], strides = [1, 1]} : vector<8x64xf32> to vector<8x32xf32>
    %19 = vector.extract_strided_slice %17 {offsets = [0, 32], sizes = [8, 32], strides = [1, 1]} : vector<8x64xf32> to vector<8x32xf32>
    %20 = vector.extract_strided_slice %11 {offsets = [0, 0], sizes = [8, 8], strides = [1, 1]} : vector<8x32xf32> to vector<8x8xf32>
    %21 = arith.truncf %20 : vector<8x8xf32> to vector<8x8xbf16>
    %22 = vector.extract_strided_slice %18 {offsets = [0, 0], sizes = [8, 8], strides = [1, 1]} : vector<8x32xf32> to vector<8x8xf32>
    %23 = arith.truncf %22 : vector<8x8xf32> to vector<8x8xbf16>
    %24 = vector.extract_strided_slice %19 {offsets = [0, 0], sizes = [8, 8], strides = [1, 1]} : vector<8x32xf32> to vector<8x8xf32>
    %25 = arith.truncf %24 : vector<8x8xf32> to vector<8x8xbf16>
    %26 = tpu.transpose %23, [1, 0] : vector<8x8xbf16> -> vector<8x8xbf16>
    %cst_15 = arith.constant dense<0.000000e+00> : vector<8x8xf32>
    %27 = tpu.matmul %21, %26, %cst_15 {dimension_numbers = #tpu.dot_dimension_numbers<[1], [0], [0], [1], [0, 0, 1, 1], [], []>} : vector<8x8xbf16>, vector<8x8xbf16>, vector<8x8xf32> -> vector<8x8xf32>
    %c0_16 = arith.constant 0 : index
    %c0_17 = arith.constant 0 : index
    %28 = vector.load %arg11[%c0_16, %c0_17] : memref<8x8xf32, #tpu.memory_space<vmem>>, vector<8x8xf32>
    %29 = arith.addf %27, %28 : vector<8x8xf32>
    %cst_18 = arith.constant dense<0xFF800000> : vector<8xf32>
    %30 = vector.multi_reduction <maximumf>, %29, %cst_18 [1] : vector<8x8xf32> to vector<8xf32>
    %31 = vector.shape_cast %30 : vector<8xf32> to vector<8x1xf32>
    %32 = vector.broadcast %31 : vector<8x1xf32> to vector<8x8xf32>
    %33 = arith.subf %29, %32 : vector<8x8xf32>
    %34 = math.exp %33 : vector<8x8xf32>
    %cst_19 = arith.constant dense<0.000000e+00> : vector<8xf32>
    %35 = vector.multi_reduction <add>, %34, %cst_19 [1] : vector<8x8xf32> to vector<8xf32>
    %36 = vector.shape_cast %35 : vector<8xf32> to vector<8x1xf32>
    %37 = tpu.reciprocal %36 {approx = true} : vector<8x1xf32> -> vector<8x1xf32>
    %38 = vector.broadcast %37 : vector<8x1xf32> to vector<8x8xf32>
    %39 = arith.mulf %34, %38 : vector<8x8xf32>
    %40 = arith.truncf %39 : vector<8x8xf32> to vector<8x8xbf16>
    %cst_20 = arith.constant dense<0.000000e+00> : vector<8x8xf32>
    %41 = tpu.matmul %40, %25, %cst_20 {dimension_numbers = #tpu.dot_dimension_numbers<[1], [0], [0], [1], [0, 0, 1, 1], [], []>} : vector<8x8xbf16>, vector<8x8xbf16>, vector<8x8xf32> -> vector<8x8xf32>
    %42 = vector.extract_strided_slice %11 {offsets = [0, 8], sizes = [8, 8], strides = [1, 1]} : vector<8x32xf32> to vector<8x8xf32>
    %43 = arith.truncf %42 : vector<8x8xf32> to vector<8x8xbf16>
    %44 = vector.extract_strided_slice %18 {offsets = [0, 8], sizes = [8, 8], strides = [1, 1]} : vector<8x32xf32> to vector<8x8xf32>
    %45 = arith.truncf %44 : vector<8x8xf32> to vector<8x8xbf16>
    %46 = vector.extract_strided_slice %19 {offsets = [0, 8], sizes = [8, 8], strides = [1, 1]} : vector<8x32xf32> to vector<8x8xf32>
    %47 = arith.truncf %46 : vector<8x8xf32> to vector<8x8xbf16>
    %48 = tpu.transpose %45, [1, 0] : vector<8x8xbf16> -> vector<8x8xbf16>
    %cst_21 = arith.constant dense<0.000000e+00> : vector<8x8xf32>
    %49 = tpu.matmul %43, %48, %cst_21 {dimension_numbers = #tpu.dot_dimension_numbers<[1], [0], [0], [1], [0, 0, 1, 1], [], []>} : vector<8x8xbf16>, vector<8x8xbf16>, vector<8x8xf32> -> vector<8x8xf32>
    %c0_22 = arith.constant 0 : index
    %c0_23 = arith.constant 0 : index
    %50 = vector.load %arg11[%c0_22, %c0_23] : memref<8x8xf32, #tpu.memory_space<vmem>>, vector<8x8xf32>
    %51 = arith.addf %49, %50 : vector<8x8xf32>
    %cst_24 = arith.constant dense<0xFF800000> : vector<8xf32>
    %52 = vector.multi_reduction <maximumf>, %51, %cst_24 [1] : vector<8x8xf32> to vector<8xf32>
    %53 = vector.shape_cast %52 : vector<8xf32> to vector<8x1xf32>
    %54 = vector.broadcast %53 : vector<8x1xf32> to vector<8x8xf32>
    %55 = arith.subf %51, %54 : vector<8x8xf32>
    %56 = math.exp %55 : vector<8x8xf32>
    %cst_25 = arith.constant dense<0.000000e+00> : vector<8xf32>
    %57 = vector.multi_reduction <add>, %56, %cst_25 [1] : vector<8x8xf32> to vector<8xf32>
    %58 = vector.shape_cast %57 : vector<8xf32> to vector<8x1xf32>
    %59 = tpu.reciprocal %58 {approx = true} : vector<8x1xf32> -> vector<8x1xf32>
    %60 = vector.broadcast %59 : vector<8x1xf32> to vector<8x8xf32>
    %61 = arith.mulf %56, %60 : vector<8x8xf32>
    %62 = arith.truncf %61 : vector<8x8xf32> to vector<8x8xbf16>
    %cst_26 = arith.constant dense<0.000000e+00> : vector<8x8xf32>
    %63 = tpu.matmul %62, %47, %cst_26 {dimension_numbers = #tpu.dot_dimension_numbers<[1], [0], [0], [1], [0, 0, 1, 1], [], []>} : vector<8x8xbf16>, vector<8x8xbf16>, vector<8x8xf32> -> vector<8x8xf32>
    %64 = vector.extract_strided_slice %11 {offsets = [0, 16], sizes = [8, 8], strides = [1, 1]} : vector<8x32xf32> to vector<8x8xf32>
    %65 = arith.truncf %64 : vector<8x8xf32> to vector<8x8xbf16>
    %66 = vector.extract_strided_slice %18 {offsets = [0, 16], sizes = [8, 8], strides = [1, 1]} : vector<8x32xf32> to vector<8x8xf32>
    %67 = arith.truncf %66 : vector<8x8xf32> to vector<8x8xbf16>
    %68 = vector.extract_strided_slice %19 {offsets = [0, 16], sizes = [8, 8], strides = [1, 1]} : vector<8x32xf32> to vector<8x8xf32>
    %69 = arith.truncf %68 : vector<8x8xf32> to vector<8x8xbf16>
    %70 = tpu.transpose %67, [1, 0] : vector<8x8xbf16> -> vector<8x8xbf16>
    %cst_27 = arith.constant dense<0.000000e+00> : vector<8x8xf32>
    %71 = tpu.matmul %65, %70, %cst_27 {dimension_numbers = #tpu.dot_dimension_numbers<[1], [0], [0], [1], [0, 0, 1, 1], [], []>} : vector<8x8xbf16>, vector<8x8xbf16>, vector<8x8xf32> -> vector<8x8xf32>
    %c0_28 = arith.constant 0 : index
    %c0_29 = arith.constant 0 : index
    %72 = vector.load %arg11[%c0_28, %c0_29] : memref<8x8xf32, #tpu.memory_space<vmem>>, vector<8x8xf32>
    %73 = arith.addf %71, %72 : vector<8x8xf32>
    %cst_30 = arith.constant dense<0xFF800000> : vector<8xf32>
    %74 = vector.multi_reduction <maximumf>, %73, %cst_30 [1] : vector<8x8xf32> to vector<8xf32>
    %75 = vector.shape_cast %74 : vector<8xf32> to vector<8x1xf32>
    %76 = vector.broadcast %75 : vector<8x1xf32> to vector<8x8xf32>
    %77 = arith.subf %73, %76 : vector<8x8xf32>
    %78 = math.exp %77 : vector<8x8xf32>
    %cst_31 = arith.constant dense<0.000000e+00> : vector<8xf32>
    %79 = vector.multi_reduction <add>, %78, %cst_31 [1] : vector<8x8xf32> to vector<8xf32>
    %80 = vector.shape_cast %79 : vector<8xf32> to vector<8x1xf32>
    %81 = tpu.reciprocal %80 {approx = true} : vector<8x1xf32> -> vector<8x1xf32>
    %82 = vector.broadcast %81 : vector<8x1xf32> to vector<8x8xf32>
    %83 = arith.mulf %78, %82 : vector<8x8xf32>
    %84 = arith.truncf %83 : vector<8x8xf32> to vector<8x8xbf16>
    %cst_32 = arith.constant dense<0.000000e+00> : vector<8x8xf32>
    %85 = tpu.matmul %84, %69, %cst_32 {dimension_numbers = #tpu.dot_dimension_numbers<[1], [0], [0], [1], [0, 0, 1, 1], [], []>} : vector<8x8xbf16>, vector<8x8xbf16>, vector<8x8xf32> -> vector<8x8xf32>
    %86 = vector.extract_strided_slice %11 {offsets = [0, 24], sizes = [8, 8], strides = [1, 1]} : vector<8x32xf32> to vector<8x8xf32>
    %87 = arith.truncf %86 : vector<8x8xf32> to vector<8x8xbf16>
    %88 = vector.extract_strided_slice %18 {offsets = [0, 24], sizes = [8, 8], strides = [1, 1]} : vector<8x32xf32> to vector<8x8xf32>
    %89 = arith.truncf %88 : vector<8x8xf32> to vector<8x8xbf16>
    %90 = vector.extract_strided_slice %19 {offsets = [0, 24], sizes = [8, 8], strides = [1, 1]} : vector<8x32xf32> to vector<8x8xf32>
    %91 = arith.truncf %90 : vector<8x8xf32> to vector<8x8xbf16>
    %92 = tpu.transpose %89, [1, 0] : vector<8x8xbf16> -> vector<8x8xbf16>
    %cst_33 = arith.constant dense<0.000000e+00> : vector<8x8xf32>
    %93 = tpu.matmul %87, %92, %cst_33 {dimension_numbers = #tpu.dot_dimension_numbers<[1], [0], [0], [1], [0, 0, 1, 1], [], []>} : vector<8x8xbf16>, vector<8x8xbf16>, vector<8x8xf32> -> vector<8x8xf32>
    %c0_34 = arith.constant 0 : index
    %c0_35 = arith.constant 0 : index
    %94 = vector.load %arg11[%c0_34, %c0_35] : memref<8x8xf32, #tpu.memory_space<vmem>>, vector<8x8xf32>
    %95 = arith.addf %93, %94 : vector<8x8xf32>
    %cst_36 = arith.constant dense<0xFF800000> : vector<8xf32>
    %96 = vector.multi_reduction <maximumf>, %95, %cst_36 [1] : vector<8x8xf32> to vector<8xf32>
    %97 = vector.shape_cast %96 : vector<8xf32> to vector<8x1xf32>
    %98 = vector.broadcast %97 : vector<8x1xf32> to vector<8x8xf32>
    %99 = arith.subf %95, %98 : vector<8x8xf32>
    %100 = math.exp %99 : vector<8x8xf32>
    %cst_37 = arith.constant dense<0.000000e+00> : vector<8xf32>
    %101 = vector.multi_reduction <add>, %100, %cst_37 [1] : vector<8x8xf32> to vector<8xf32>
    %102 = vector.shape_cast %101 : vector<8xf32> to vector<8x1xf32>
    %103 = tpu.reciprocal %102 {approx = true} : vector<8x1xf32> -> vector<8x1xf32>
    %104 = vector.broadcast %103 : vector<8x1xf32> to vector<8x8xf32>
    %105 = arith.mulf %100, %104 : vector<8x8xf32>
    %106 = arith.truncf %105 : vector<8x8xf32> to vector<8x8xbf16>
    %cst_38 = arith.constant dense<0.000000e+00> : vector<8x8xf32>
    %107 = tpu.matmul %106, %91, %cst_38 {dimension_numbers = #tpu.dot_dimension_numbers<[1], [0], [0], [1], [0, 0, 1, 1], [], []>} : vector<8x8xbf16>, vector<8x8xbf16>, vector<8x8xf32> -> vector<8x8xf32>
    %108 = tpu.concatenate %41, %63, %85, %107 in 1 : vector<8x8xf32>, vector<8x8xf32>, vector<8x8xf32>, vector<8x8xf32> -> vector<8x32xf32>
    %109 = arith.truncf %108 : vector<8x32xf32> to vector<8x32xbf16>
    %c0_39 = arith.constant 0 : index
    %c0_40 = arith.constant 0 : index
    %110 = vector.load %arg7[%c0_39, %c0_40] : memref<32x32xbf16, #tpu.memory_space<vmem>>, vector<32x32xbf16>
    %cst_41 = arith.constant dense<0.000000e+00> : vector<8x32xf32>
    %111 = tpu.matmul %109, %110, %cst_41 {dimension_numbers = #tpu.dot_dimension_numbers<[1], [0], [0], [1], [0, 0, 1, 1], [], []>} : vector<8x32xbf16>, vector<32x32xbf16>, vector<8x32xf32> -> vector<8x32xf32>
    %c0_42 = arith.constant 0 : index
    %c0_43 = arith.constant 0 : index
    %112 = vector.load %arg8[%c0_42, %c0_43] : memref<1x32xf32, #tpu.memory_space<vmem>>, vector<1x32xf32>
    %113 = vector.broadcast %112 : vector<1x32xf32> to vector<8x32xf32>
    %114 = arith.addf %111, %113 : vector<8x32xf32>
    %115 = arith.addf %1, %114 : vector<8x32xf32>
    %cst_44 = arith.constant dense<0.000000e+00> : vector<8xf32>
    %116 = vector.multi_reduction <add>, %115, %cst_44 [1] : vector<8x32xf32> to vector<8xf32>
    %117 = vector.shape_cast %116 : vector<8xf32> to vector<8x1xf32>
    %cst_45 = arith.constant 3.200000e+01 : f32
    %118 = vector.broadcast %cst_45 : f32 to vector<8x1xf32>
    %119 = arith.divf %117, %118 : vector<8x1xf32>
    %120 = vector.broadcast %119 : vector<8x1xf32> to vector<8x32xf32>
    %121 = arith.subf %115, %120 : vector<8x32xf32>
    %122 = arith.mulf %121, %121 : vector<8x32xf32>
    %cst_46 = arith.constant dense<0.000000e+00> : vector<8xf32>
    %123 = vector.multi_reduction <add>, %122, %cst_46 [1] : vector<8x32xf32> to vector<8xf32>
    %124 = vector.shape_cast %123 : vector<8xf32> to vector<8x1xf32>
    %cst_47 = arith.constant 3.200000e+01 : f32
    %125 = vector.broadcast %cst_47 : f32 to vector<8x1xf32>
    %126 = arith.divf %124, %125 : vector<8x1xf32>
    %127 = vector.broadcast %119 : vector<8x1xf32> to vector<8x32xf32>
    %128 = arith.subf %115, %127 : vector<8x32xf32>
    %cst_48 = arith.constant 9.99999974E-6 : f32
    %129 = vector.broadcast %cst_48 : f32 to vector<8x1xf32>
    %130 = arith.addf %126, %129 : vector<8x1xf32>
    %131 = math.rsqrt %130 : vector<8x1xf32>
    %132 = vector.broadcast %131 : vector<8x1xf32> to vector<8x32xf32>
    %133 = arith.mulf %128, %132 : vector<8x32xf32>
    %c0_49 = arith.constant 0 : index
    %c0_50 = arith.constant 0 : index
    %134 = vector.load %arg9[%c0_49, %c0_50] : memref<1x32xf32, #tpu.memory_space<vmem>>, vector<1x32xf32>
    %135 = vector.broadcast %134 : vector<1x32xf32> to vector<8x32xf32>
    %136 = arith.mulf %133, %135 : vector<8x32xf32>
    %c0_51 = arith.constant 0 : index
    %c0_52 = arith.constant 0 : index
    %137 = vector.load %arg10[%c0_51, %c0_52] : memref<1x32xf32, #tpu.memory_space<vmem>>, vector<1x32xf32>
    %138 = vector.broadcast %137 : vector<1x32xf32> to vector<8x32xf32>
    %139 = arith.addf %136, %138 : vector<8x32xf32>
    %c0_53 = arith.constant 0 : index
    %c0_54 = arith.constant 0 : index
    %c0_55 = arith.constant 0 : index
    %140 = vector.load %arg12[%c0_53, %c0_54, %c0_55] : memref<1x8x32xf32, #tpu.memory_space<vmem>>, vector<1x8x32xf32>
    %141 = vector.shape_cast %140 : vector<1x8x32xf32> to vector<8x32xf32>
    %142 = vector.shape_cast %139 : vector<8x32xf32> to vector<1x8x32xf32>
    tpu.vector_store %arg12[%c0_53, %c0_54, %c0_55], %142 {strides = array<i32>} : memref<1x8x32xf32, #tpu.memory_space<vmem>>, vector<1x8x32xf32>,
    return
  }
  func.func @transform_0(%arg0: i32) -> (i32, i32, i32) {
    %c0_i32 = arith.constant 0 : i32
    %c0_i32_0 = arith.constant 0 : i32
    %c0_i32_1 = arith.constant 0 : i32
    return %arg0, %c0_i32, %c0_i32_0 : i32, i32, i32
  }
  func.func @transform_1(%arg0: i32) -> (i32, i32, i32) {
    %c0_i32 = arith.constant 0 : i32
    %c0_i32_0 = arith.constant 0 : i32
    %c0_i32_1 = arith.constant 0 : i32
    return %arg0, %c0_i32, %c0_i32_0 : i32, i32, i32
  }
  func.func @transform_2(%arg0: i32) -> (i32, i32) {
    %c0_i32 = arith.constant 0 : i32
    %c0_i32_0 = arith.constant 0 : i32
    %c0_i32_1 = arith.constant 0 : i32
    return %c0_i32, %c0_i32_0 : i32, i32
  }
  func.func @transform_3(%arg0: i32) -> (i32, i32) {
    %c0_i32 = arith.constant 0 : i32
    %c0_i32_0 = arith.constant 0 : i32
    %c0_i32_1 = arith.constant 0 : i32
    return %c0_i32, %c0_i32_0 : i32, i32
  }
  func.func @transform_4(%arg0: i32) -> (i32, i32) {
    %c0_i32 = arith.constant 0 : i32
    %c0_i32_0 = arith.constant 0 : i32
    %c0_i32_1 = arith.constant 0 : i32
    return %c0_i32, %c0_i32_0 : i32, i32
  }
  func.func @transform_5(%arg0: i32) -> (i32, i32) {
    %c0_i32 = arith.constant 0 : i32
    %c0_i32_0 = arith.constant 0 : i32
    %c0_i32_1 = arith.constant 0 : i32
    return %c0_i32, %c0_i32_0 : i32, i32
  }
  func.func @transform_6(%arg0: i32) -> (i32, i32) {
    %c0_i32 = arith.constant 0 : i32
    %c0_i32_0 = arith.constant 0 : i32
    %c0_i32_1 = arith.constant 0 : i32
    return %c0_i32, %c0_i32_0 : i32, i32
  }
  func.func @transform_7(%arg0: i32) -> (i32, i32) {
    %c0_i32 = arith.constant 0 : i32
    %c0_i32_0 = arith.constant 0 : i32
    %c0_i32_1 = arith.constant 0 : i32
    return %c0_i32, %c0_i32_0 : i32, i32
  }
  func.func @transform_8(%arg0: i32) -> (i32, i32) {
    %c0_i32 = arith.constant 0 : i32
    %c0_i32_0 = arith.constant 0 : i32
    %c0_i32_1 = arith.constant 0 : i32
    return %c0_i32, %c0_i32_0 : i32, i32
  }
  func.func @transform_9(%arg0: i32) -> (i32, i32) {
    %c0_i32 = arith.constant 0 : i32
    %c0_i32_0 = arith.constant 0 : i32
    %c0_i32_1 = arith.constant 0 : i32
    return %c0_i32, %c0_i32_0 : i32, i32
  }
  func.func @transform_10(%arg0: i32) -> (i32, i32) {
    %c0_i32 = arith.constant 0 : i32
    %c0_i32_0 = arith.constant 0 : i32
    %c0_i32_1 = arith.constant 0 : i32
    return %c0_i32, %c0_i32_0 : i32, i32
  }
  func.func @transform_11(%arg0: i32) -> (i32, i32, i32) {
    %c0_i32 = arith.constant 0 : i32
    %c0_i32_0 = arith.constant 0 : i32
    %c0_i32_1 = arith.constant 0 : i32
    return %arg0, %c0_i32, %c0_i32_0 : i32, i32, i32
  }
}

module attributes {stable_mosaic.version = 11 : i64} {
  func.func @_attn_sublayer_kernel(%arg0: i32, %arg1: memref<1x8x32xf32, #tpu.memory_space<vmem>>, %arg2: memref<1x8x32xf32, #tpu.memory_space<vmem>>, %arg3: memref<32x32xbf16, #tpu.memory_space<vmem>>, %arg4: memref<1x32xf32, #tpu.memory_space<vmem>>, %arg5: memref<32x64xbf16, #tpu.memory_space<vmem>>, %arg6: memref<1x64xf32, #tpu.memory_space<vmem>>, %arg7: memref<32x32xbf16, #tpu.memory_space<vmem>>, %arg8: memref<1x32xf32, #tpu.memory_space<vmem>>, %arg9: memref<1x32xf32, #tpu.memory_space<vmem>>, %arg10: memref<1x32xf32, #tpu.memory_space<vmem>>, %arg11: memref<1x8x32xf32, #tpu.memory_space<vmem>>) attributes {dimension_semantics = [#tpu.dimension_semantics<parallel>], iteration_bounds = array<i64: 2>, scalar_prefetch = 0 : i64, scratch_operands = 0 : i64, tpu.core_type = #tpu.core_type<tc>, window_params = [{transform_indices = @transform_0, window_bounds = array<i64: 1, 8, 32>}, {transform_indices = @transform_1, window_bounds = array<i64: 1, 8, 32>}, {pipeline_mode = #tpu.pipeline_mode<synchronous>, transform_indices = @transform_2, window_bounds = array<i64: 32, 32>}, {pipeline_mode = #tpu.pipeline_mode<synchronous>, transform_indices = @transform_3, window_bounds = array<i64: 1, 32>}, {pipeline_mode = #tpu.pipeline_mode<synchronous>, transform_indices = @transform_4, window_bounds = array<i64: 32, 64>}, {pipeline_mode = #tpu.pipeline_mode<synchronous>, transform_indices = @transform_5, window_bounds = array<i64: 1, 64>}, {pipeline_mode = #tpu.pipeline_mode<synchronous>, transform_indices = @transform_6, window_bounds = array<i64: 32, 32>}, {pipeline_mode = #tpu.pipeline_mode<synchronous>, transform_indices = @transform_7, window_bounds = array<i64: 1, 32>}, {pipeline_mode = #tpu.pipeline_mode<synchronous>, transform_indices = @transform_8, window_bounds = array<i64: 1, 32>}, {pipeline_mode = #tpu.pipeline_mode<synchronous>, transform_indices = @transform_9, window_bounds = array<i64: 1, 32>}, {transform_indices = @transform_10, window_bounds = array<i64: 1, 8, 32>}]} {
    %c0 = arith.constant 0 : index
    %c0_0 = arith.constant 0 : index
    %c0_1 = arith.constant 0 : index
    %0 = vector.load %arg1[%c0, %c0_0, %c0_1] : memref<1x8x32xf32, #tpu.memory_space<vmem>>, vector<1x8x32xf32>
    %1 = vector.shape_cast %0 : vector<1x8x32xf32> to vector<8x32xf32>
    %c0_2 = arith.constant 0 : index
    %c0_3 = arith.constant 0 : index
    %c0_4 = arith.constant 0 : index
    %2 = vector.load %arg2[%c0_2, %c0_3, %c0_4] : memref<1x8x32xf32, #tpu.memory_space<vmem>>, vector<1x8x32xf32>
    %3 = vector.shape_cast %2 : vector<1x8x32xf32> to vector<8x32xf32>
    %4 = arith.truncf %1 : vector<8x32xf32> to vector<8x32xbf16>
    %c0_5 = arith.constant 0 : index
    %c0_6 = arith.constant 0 : index
    %5 = vector.load %arg3[%c0_5, %c0_6] : memref<32x32xbf16, #tpu.memory_space<vmem>>, vector<32x32xbf16>
    %cst = arith.constant dense<0.000000e+00> : vector<8x32xf32>
    %6 = tpu.matmul %4, %5, %cst {dimension_numbers = #tpu.dot_dimension_numbers<[1], [0], [0], [1], [0, 0, 1, 1], [], []>} : vector<8x32xbf16>, vector<32x32xbf16>, vector<8x32xf32> -> vector<8x32xf32>
    %c0_7 = arith.constant 0 : index
    %c0_8 = arith.constant 0 : index
    %7 = vector.load %arg4[%c0_7, %c0_8] : memref<1x32xf32, #tpu.memory_space<vmem>>, vector<1x32xf32>
    %8 = vector.broadcast %7 : vector<1x32xf32> to vector<8x32xf32>
    %9 = arith.addf %6, %8 : vector<8x32xf32>
    %cst_9 = arith.constant 0.353553385 : f32
    %10 = vector.broadcast %cst_9 : f32 to vector<8x32xf32>
    %11 = arith.mulf %9, %10 : vector<8x32xf32>
    %12 = arith.truncf %3 : vector<8x32xf32> to vector<8x32xbf16>
    %c0_10 = arith.constant 0 : index
    %c0_11 = arith.constant 0 : index
    %13 = vector.load %arg5[%c0_10, %c0_11] : memref<32x64xbf16, #tpu.memory_space<vmem>>, vector<32x64xbf16>
    %cst_12 = arith.constant dense<0.000000e+00> : vector<8x64xf32>
    %14 = tpu.matmul %12, %13, %cst_12 {dimension_numbers = #tpu.dot_dimension_numbers<[1], [0], [0], [1], [0, 0, 1, 1], [], []>} : vector<8x32xbf16>, vector<32x64xbf16>, vector<8x64xf32> -> vector<8x64xf32>
    %c0_13 = arith.constant 0 : index
    %c0_14 = arith.constant 0 : index
    %15 = vector.load %arg6[%c0_13, %c0_14] : memref<1x64xf32, #tpu.memory_space<vmem>>, vector<1x64xf32>
    %16 = vector.broadcast %15 : vector<1x64xf32> to vector<8x64xf32>
    %17 = arith.addf %14, %16 : vector<8x64xf32>
    %18 = vector.extract_strided_slice %17 {offsets = [0, 0], sizes = [8, 32], strides = [1, 1]} : vector<8x64xf32> to vector<8x32xf32>
    %19 = vector.extract_strided_slice %17 {offsets = [0, 32], sizes = [8, 32], strides = [1, 1]} : vector<8x64xf32> to vector<8x32xf32>
    %20 = vector.extract_strided_slice %11 {offsets = [0, 0], sizes = [8, 8], strides = [1, 1]} : vector<8x32xf32> to vector<8x8xf32>
    %21 = arith.truncf %20 : vector<8x8xf32> to vector<8x8xbf16>
    %22 = vector.extract_strided_slice %18 {offsets = [0, 0], sizes = [8, 8], strides = [1, 1]} : vector<8x32xf32> to vector<8x8xf32>
    %23 = arith.truncf %22 : vector<8x8xf32> to vector<8x8xbf16>
    %24 = vector.extract_strided_slice %19 {offsets = [0, 0], sizes = [8, 8], strides = [1, 1]} : vector<8x32xf32> to vector<8x8xf32>
    %25 = arith.truncf %24 : vector<8x8xf32> to vector<8x8xbf16>
    %26 = tpu.transpose %23, [1, 0] : vector<8x8xbf16> -> vector<8x8xbf16>
    %cst_15 = arith.constant dense<0.000000e+00> : vector<8x8xf32>
    %27 = tpu.matmul %21, %26, %cst_15 {dimension_numbers = #tpu.dot_dimension_numbers<[1], [0], [0], [1], [0, 0, 1, 1], [], []>} : vector<8x8xbf16>, vector<8x8xbf16>, vector<8x8xf32> -> vector<8x8xf32>
    %cst_16 = arith.constant dense<0xFF800000> : vector<8xf32>
    %28 = vector.multi_reduction <maximumf>, %27, %cst_16 [1] : vector<8x8xf32> to vector<8xf32>
    %29 = vector.shape_cast %28 : vector<8xf32> to vector<8x1xf32>
    %30 = vector.broadcast %29 : vector<8x1xf32> to vector<8x8xf32>
    %31 = arith.subf %27, %30 : vector<8x8xf32>
    %32 = math.exp %31 : vector<8x8xf32>
    %cst_17 = arith.constant dense<0.000000e+00> : vector<8xf32>
    %33 = vector.multi_reduction <add>, %32, %cst_17 [1] : vector<8x8xf32> to vector<8xf32>
    %34 = vector.shape_cast %33 : vector<8xf32> to vector<8x1xf32>
    %35 = tpu.reciprocal %34 {approx = true} : vector<8x1xf32> -> vector<8x1xf32>
    %36 = vector.broadcast %35 : vector<8x1xf32> to vector<8x8xf32>
    %37 = arith.mulf %32, %36 : vector<8x8xf32>
    %38 = arith.truncf %37 : vector<8x8xf32> to vector<8x8xbf16>
    %cst_18 = arith.constant dense<0.000000e+00> : vector<8x8xf32>
    %39 = tpu.matmul %38, %25, %cst_18 {dimension_numbers = #tpu.dot_dimension_numbers<[1], [0], [0], [1], [0, 0, 1, 1], [], []>} : vector<8x8xbf16>, vector<8x8xbf16>, vector<8x8xf32> -> vector<8x8xf32>
    %40 = vector.extract_strided_slice %11 {offsets = [0, 8], sizes = [8, 8], strides = [1, 1]} : vector<8x32xf32> to vector<8x8xf32>
    %41 = arith.truncf %40 : vector<8x8xf32> to vector<8x8xbf16>
    %42 = vector.extract_strided_slice %18 {offsets = [0, 8], sizes = [8, 8], strides = [1, 1]} : vector<8x32xf32> to vector<8x8xf32>
    %43 = arith.truncf %42 : vector<8x8xf32> to vector<8x8xbf16>
    %44 = vector.extract_strided_slice %19 {offsets = [0, 8], sizes = [8, 8], strides = [1, 1]} : vector<8x32xf32> to vector<8x8xf32>
    %45 = arith.truncf %44 : vector<8x8xf32> to vector<8x8xbf16>
    %46 = tpu.transpose %43, [1, 0] : vector<8x8xbf16> -> vector<8x8xbf16>
    %cst_19 = arith.constant dense<0.000000e+00> : vector<8x8xf32>
    %47 = tpu.matmul %41, %46, %cst_19 {dimension_numbers = #tpu.dot_dimension_numbers<[1], [0], [0], [1], [0, 0, 1, 1], [], []>} : vector<8x8xbf16>, vector<8x8xbf16>, vector<8x8xf32> -> vector<8x8xf32>
    %cst_20 = arith.constant dense<0xFF800000> : vector<8xf32>
    %48 = vector.multi_reduction <maximumf>, %47, %cst_20 [1] : vector<8x8xf32> to vector<8xf32>
    %49 = vector.shape_cast %48 : vector<8xf32> to vector<8x1xf32>
    %50 = vector.broadcast %49 : vector<8x1xf32> to vector<8x8xf32>
    %51 = arith.subf %47, %50 : vector<8x8xf32>
    %52 = math.exp %51 : vector<8x8xf32>
    %cst_21 = arith.constant dense<0.000000e+00> : vector<8xf32>
    %53 = vector.multi_reduction <add>, %52, %cst_21 [1] : vector<8x8xf32> to vector<8xf32>
    %54 = vector.shape_cast %53 : vector<8xf32> to vector<8x1xf32>
    %55 = tpu.reciprocal %54 {approx = true} : vector<8x1xf32> -> vector<8x1xf32>
    %56 = vector.broadcast %55 : vector<8x1xf32> to vector<8x8xf32>
    %57 = arith.mulf %52, %56 : vector<8x8xf32>
    %58 = arith.truncf %57 : vector<8x8xf32> to vector<8x8xbf16>
    %cst_22 = arith.constant dense<0.000000e+00> : vector<8x8xf32>
    %59 = tpu.matmul %58, %45, %cst_22 {dimension_numbers = #tpu.dot_dimension_numbers<[1], [0], [0], [1], [0, 0, 1, 1], [], []>} : vector<8x8xbf16>, vector<8x8xbf16>, vector<8x8xf32> -> vector<8x8xf32>
    %60 = vector.extract_strided_slice %11 {offsets = [0, 16], sizes = [8, 8], strides = [1, 1]} : vector<8x32xf32> to vector<8x8xf32>
    %61 = arith.truncf %60 : vector<8x8xf32> to vector<8x8xbf16>
    %62 = vector.extract_strided_slice %18 {offsets = [0, 16], sizes = [8, 8], strides = [1, 1]} : vector<8x32xf32> to vector<8x8xf32>
    %63 = arith.truncf %62 : vector<8x8xf32> to vector<8x8xbf16>
    %64 = vector.extract_strided_slice %19 {offsets = [0, 16], sizes = [8, 8], strides = [1, 1]} : vector<8x32xf32> to vector<8x8xf32>
    %65 = arith.truncf %64 : vector<8x8xf32> to vector<8x8xbf16>
    %66 = tpu.transpose %63, [1, 0] : vector<8x8xbf16> -> vector<8x8xbf16>
    %cst_23 = arith.constant dense<0.000000e+00> : vector<8x8xf32>
    %67 = tpu.matmul %61, %66, %cst_23 {dimension_numbers = #tpu.dot_dimension_numbers<[1], [0], [0], [1], [0, 0, 1, 1], [], []>} : vector<8x8xbf16>, vector<8x8xbf16>, vector<8x8xf32> -> vector<8x8xf32>
    %cst_24 = arith.constant dense<0xFF800000> : vector<8xf32>
    %68 = vector.multi_reduction <maximumf>, %67, %cst_24 [1] : vector<8x8xf32> to vector<8xf32>
    %69 = vector.shape_cast %68 : vector<8xf32> to vector<8x1xf32>
    %70 = vector.broadcast %69 : vector<8x1xf32> to vector<8x8xf32>
    %71 = arith.subf %67, %70 : vector<8x8xf32>
    %72 = math.exp %71 : vector<8x8xf32>
    %cst_25 = arith.constant dense<0.000000e+00> : vector<8xf32>
    %73 = vector.multi_reduction <add>, %72, %cst_25 [1] : vector<8x8xf32> to vector<8xf32>
    %74 = vector.shape_cast %73 : vector<8xf32> to vector<8x1xf32>
    %75 = tpu.reciprocal %74 {approx = true} : vector<8x1xf32> -> vector<8x1xf32>
    %76 = vector.broadcast %75 : vector<8x1xf32> to vector<8x8xf32>
    %77 = arith.mulf %72, %76 : vector<8x8xf32>
    %78 = arith.truncf %77 : vector<8x8xf32> to vector<8x8xbf16>
    %cst_26 = arith.constant dense<0.000000e+00> : vector<8x8xf32>
    %79 = tpu.matmul %78, %65, %cst_26 {dimension_numbers = #tpu.dot_dimension_numbers<[1], [0], [0], [1], [0, 0, 1, 1], [], []>} : vector<8x8xbf16>, vector<8x8xbf16>, vector<8x8xf32> -> vector<8x8xf32>
    %80 = vector.extract_strided_slice %11 {offsets = [0, 24], sizes = [8, 8], strides = [1, 1]} : vector<8x32xf32> to vector<8x8xf32>
    %81 = arith.truncf %80 : vector<8x8xf32> to vector<8x8xbf16>
    %82 = vector.extract_strided_slice %18 {offsets = [0, 24], sizes = [8, 8], strides = [1, 1]} : vector<8x32xf32> to vector<8x8xf32>
    %83 = arith.truncf %82 : vector<8x8xf32> to vector<8x8xbf16>
    %84 = vector.extract_strided_slice %19 {offsets = [0, 24], sizes = [8, 8], strides = [1, 1]} : vector<8x32xf32> to vector<8x8xf32>
    %85 = arith.truncf %84 : vector<8x8xf32> to vector<8x8xbf16>
    %86 = tpu.transpose %83, [1, 0] : vector<8x8xbf16> -> vector<8x8xbf16>
    %cst_27 = arith.constant dense<0.000000e+00> : vector<8x8xf32>
    %87 = tpu.matmul %81, %86, %cst_27 {dimension_numbers = #tpu.dot_dimension_numbers<[1], [0], [0], [1], [0, 0, 1, 1], [], []>} : vector<8x8xbf16>, vector<8x8xbf16>, vector<8x8xf32> -> vector<8x8xf32>
    %cst_28 = arith.constant dense<0xFF800000> : vector<8xf32>
    %88 = vector.multi_reduction <maximumf>, %87, %cst_28 [1] : vector<8x8xf32> to vector<8xf32>
    %89 = vector.shape_cast %88 : vector<8xf32> to vector<8x1xf32>
    %90 = vector.broadcast %89 : vector<8x1xf32> to vector<8x8xf32>
    %91 = arith.subf %87, %90 : vector<8x8xf32>
    %92 = math.exp %91 : vector<8x8xf32>
    %cst_29 = arith.constant dense<0.000000e+00> : vector<8xf32>
    %93 = vector.multi_reduction <add>, %92, %cst_29 [1] : vector<8x8xf32> to vector<8xf32>
    %94 = vector.shape_cast %93 : vector<8xf32> to vector<8x1xf32>
    %95 = tpu.reciprocal %94 {approx = true} : vector<8x1xf32> -> vector<8x1xf32>
    %96 = vector.broadcast %95 : vector<8x1xf32> to vector<8x8xf32>
    %97 = arith.mulf %92, %96 : vector<8x8xf32>
    %98 = arith.truncf %97 : vector<8x8xf32> to vector<8x8xbf16>
    %cst_30 = arith.constant dense<0.000000e+00> : vector<8x8xf32>
    %99 = tpu.matmul %98, %85, %cst_30 {dimension_numbers = #tpu.dot_dimension_numbers<[1], [0], [0], [1], [0, 0, 1, 1], [], []>} : vector<8x8xbf16>, vector<8x8xbf16>, vector<8x8xf32> -> vector<8x8xf32>
    %100 = tpu.concatenate %39, %59, %79, %99 in 1 : vector<8x8xf32>, vector<8x8xf32>, vector<8x8xf32>, vector<8x8xf32> -> vector<8x32xf32>
    %101 = arith.truncf %100 : vector<8x32xf32> to vector<8x32xbf16>
    %c0_31 = arith.constant 0 : index
    %c0_32 = arith.constant 0 : index
    %102 = vector.load %arg7[%c0_31, %c0_32] : memref<32x32xbf16, #tpu.memory_space<vmem>>, vector<32x32xbf16>
    %cst_33 = arith.constant dense<0.000000e+00> : vector<8x32xf32>
    %103 = tpu.matmul %101, %102, %cst_33 {dimension_numbers = #tpu.dot_dimension_numbers<[1], [0], [0], [1], [0, 0, 1, 1], [], []>} : vector<8x32xbf16>, vector<32x32xbf16>, vector<8x32xf32> -> vector<8x32xf32>
    %c0_34 = arith.constant 0 : index
    %c0_35 = arith.constant 0 : index
    %104 = vector.load %arg8[%c0_34, %c0_35] : memref<1x32xf32, #tpu.memory_space<vmem>>, vector<1x32xf32>
    %105 = vector.broadcast %104 : vector<1x32xf32> to vector<8x32xf32>
    %106 = arith.addf %103, %105 : vector<8x32xf32>
    %107 = arith.addf %1, %106 : vector<8x32xf32>
    %cst_36 = arith.constant dense<0.000000e+00> : vector<8xf32>
    %108 = vector.multi_reduction <add>, %107, %cst_36 [1] : vector<8x32xf32> to vector<8xf32>
    %109 = vector.shape_cast %108 : vector<8xf32> to vector<8x1xf32>
    %cst_37 = arith.constant 3.200000e+01 : f32
    %110 = vector.broadcast %cst_37 : f32 to vector<8x1xf32>
    %111 = arith.divf %109, %110 : vector<8x1xf32>
    %112 = vector.broadcast %111 : vector<8x1xf32> to vector<8x32xf32>
    %113 = arith.subf %107, %112 : vector<8x32xf32>
    %114 = arith.mulf %113, %113 : vector<8x32xf32>
    %cst_38 = arith.constant dense<0.000000e+00> : vector<8xf32>
    %115 = vector.multi_reduction <add>, %114, %cst_38 [1] : vector<8x32xf32> to vector<8xf32>
    %116 = vector.shape_cast %115 : vector<8xf32> to vector<8x1xf32>
    %cst_39 = arith.constant 3.200000e+01 : f32
    %117 = vector.broadcast %cst_39 : f32 to vector<8x1xf32>
    %118 = arith.divf %116, %117 : vector<8x1xf32>
    %119 = vector.broadcast %111 : vector<8x1xf32> to vector<8x32xf32>
    %120 = arith.subf %107, %119 : vector<8x32xf32>
    %cst_40 = arith.constant 9.99999974E-6 : f32
    %121 = vector.broadcast %cst_40 : f32 to vector<8x1xf32>
    %122 = arith.addf %118, %121 : vector<8x1xf32>
    %123 = math.rsqrt %122 : vector<8x1xf32>
    %124 = vector.broadcast %123 : vector<8x1xf32> to vector<8x32xf32>
    %125 = arith.mulf %120, %124 : vector<8x32xf32>
    %c0_41 = arith.constant 0 : index
    %c0_42 = arith.constant 0 : index
    %126 = vector.load %arg9[%c0_41, %c0_42] : memref<1x32xf32, #tpu.memory_space<vmem>>, vector<1x32xf32>
    %127 = vector.broadcast %126 : vector<1x32xf32> to vector<8x32xf32>
    %128 = arith.mulf %125, %127 : vector<8x32xf32>
    %c0_43 = arith.constant 0 : index
    %c0_44 = arith.constant 0 : index
    %129 = vector.load %arg10[%c0_43, %c0_44] : memref<1x32xf32, #tpu.memory_space<vmem>>, vector<1x32xf32>
    %130 = vector.broadcast %129 : vector<1x32xf32> to vector<8x32xf32>
    %131 = arith.addf %128, %130 : vector<8x32xf32>
    %c0_45 = arith.constant 0 : index
    %c0_46 = arith.constant 0 : index
    %c0_47 = arith.constant 0 : index
    %132 = vector.load %arg11[%c0_45, %c0_46, %c0_47] : memref<1x8x32xf32, #tpu.memory_space<vmem>>, vector<1x8x32xf32>
    %133 = vector.shape_cast %132 : vector<1x8x32xf32> to vector<8x32xf32>
    %134 = vector.shape_cast %131 : vector<8x32xf32> to vector<1x8x32xf32>
    tpu.vector_store %arg11[%c0_45, %c0_46, %c0_47], %134 {strides = array<i32>} : memref<1x8x32xf32, #tpu.memory_space<vmem>>, vector<1x8x32xf32>,
    return
  }
  func.func @transform_0(%arg0: i32) -> (i32, i32, i32) {
    %c0_i32 = arith.constant 0 : i32
    %c0_i32_0 = arith.constant 0 : i32
    %c0_i32_1 = arith.constant 0 : i32
    return %arg0, %c0_i32, %c0_i32_0 : i32, i32, i32
  }
  func.func @transform_1(%arg0: i32) -> (i32, i32, i32) {
    %c0_i32 = arith.constant 0 : i32
    %c0_i32_0 = arith.constant 0 : i32
    %c0_i32_1 = arith.constant 0 : i32
    return %arg0, %c0_i32, %c0_i32_0 : i32, i32, i32
  }
  func.func @transform_2(%arg0: i32) -> (i32, i32) {
    %c0_i32 = arith.constant 0 : i32
    %c0_i32_0 = arith.constant 0 : i32
    %c0_i32_1 = arith.constant 0 : i32
    return %c0_i32, %c0_i32_0 : i32, i32
  }
  func.func @transform_3(%arg0: i32) -> (i32, i32) {
    %c0_i32 = arith.constant 0 : i32
    %c0_i32_0 = arith.constant 0 : i32
    %c0_i32_1 = arith.constant 0 : i32
    return %c0_i32, %c0_i32_0 : i32, i32
  }
  func.func @transform_4(%arg0: i32) -> (i32, i32) {
    %c0_i32 = arith.constant 0 : i32
    %c0_i32_0 = arith.constant 0 : i32
    %c0_i32_1 = arith.constant 0 : i32
    return %c0_i32, %c0_i32_0 : i32, i32
  }
  func.func @transform_5(%arg0: i32) -> (i32, i32) {
    %c0_i32 = arith.constant 0 : i32
    %c0_i32_0 = arith.constant 0 : i32
    %c0_i32_1 = arith.constant 0 : i32
    return %c0_i32, %c0_i32_0 : i32, i32
  }
  func.func @transform_6(%arg0: i32) -> (i32, i32) {
    %c0_i32 = arith.constant 0 : i32
    %c0_i32_0 = arith.constant 0 : i32
    %c0_i32_1 = arith.constant 0 : i32
    return %c0_i32, %c0_i32_0 : i32, i32
  }
  func.func @transform_7(%arg0: i32) -> (i32, i32) {
    %c0_i32 = arith.constant 0 : i32
    %c0_i32_0 = arith.constant 0 : i32
    %c0_i32_1 = arith.constant 0 : i32
    return %c0_i32, %c0_i32_0 : i32, i32
  }
  func.func @transform_8(%arg0: i32) -> (i32, i32) {
    %c0_i32 = arith.constant 0 : i32
    %c0_i32_0 = arith.constant 0 : i32
    %c0_i32_1 = arith.constant 0 : i32
    return %c0_i32, %c0_i32_0 : i32, i32
  }
  func.func @transform_9(%arg0: i32) -> (i32, i32) {
    %c0_i32 = arith.constant 0 : i32
    %c0_i32_0 = arith.constant 0 : i32
    %c0_i32_1 = arith.constant 0 : i32
    return %c0_i32, %c0_i32_0 : i32, i32
  }
  func.func @transform_10(%arg0: i32) -> (i32, i32, i32) {
    %c0_i32 = arith.constant 0 : i32
    %c0_i32_0 = arith.constant 0 : i32
    %c0_i32_1 = arith.constant 0 : i32
    return %arg0, %c0_i32, %c0_i32_0 : i32, i32, i32
  }
}

module attributes {stable_mosaic.version = 11 : i64} {
  func.func @_ffn_add_ln_kernel(%arg0: i32, %arg1: memref<16x32xf32, #tpu.memory_space<vmem>>, %arg2: memref<32x64xbf16, #tpu.memory_space<vmem>>, %arg3: memref<1x64xf32, #tpu.memory_space<vmem>>, %arg4: memref<64x32xbf16, #tpu.memory_space<vmem>>, %arg5: memref<1x32xf32, #tpu.memory_space<vmem>>, %arg6: memref<1x32xf32, #tpu.memory_space<vmem>>, %arg7: memref<1x32xf32, #tpu.memory_space<vmem>>, %arg8: memref<16x32xf32, #tpu.memory_space<vmem>>) attributes {dimension_semantics = [#tpu.dimension_semantics<parallel>], iteration_bounds = array<i64: 1>, scalar_prefetch = 0 : i64, scratch_operands = 0 : i64, tpu.core_type = #tpu.core_type<tc>, window_params = [{transform_indices = @transform_0, window_bounds = array<i64: 16, 32>}, {pipeline_mode = #tpu.pipeline_mode<synchronous>, transform_indices = @transform_1, window_bounds = array<i64: 32, 64>}, {pipeline_mode = #tpu.pipeline_mode<synchronous>, transform_indices = @transform_2, window_bounds = array<i64: 1, 64>}, {pipeline_mode = #tpu.pipeline_mode<synchronous>, transform_indices = @transform_3, window_bounds = array<i64: 64, 32>}, {pipeline_mode = #tpu.pipeline_mode<synchronous>, transform_indices = @transform_4, window_bounds = array<i64: 1, 32>}, {pipeline_mode = #tpu.pipeline_mode<synchronous>, transform_indices = @transform_5, window_bounds = array<i64: 1, 32>}, {pipeline_mode = #tpu.pipeline_mode<synchronous>, transform_indices = @transform_6, window_bounds = array<i64: 1, 32>}, {transform_indices = @transform_7, window_bounds = array<i64: 16, 32>}]} {
    %c0 = arith.constant 0 : index
    %c0_0 = arith.constant 0 : index
    %0 = vector.load %arg1[%c0, %c0_0] : memref<16x32xf32, #tpu.memory_space<vmem>>, vector<16x32xf32>
    %1 = arith.truncf %0 : vector<16x32xf32> to vector<16x32xbf16>
    %c0_1 = arith.constant 0 : index
    %c0_2 = arith.constant 0 : index
    %2 = vector.load %arg2[%c0_1, %c0_2] : memref<32x64xbf16, #tpu.memory_space<vmem>>, vector<32x64xbf16>
    %cst = arith.constant dense<0.000000e+00> : vector<16x64xf32>
    %3 = tpu.matmul %1, %2, %cst {dimension_numbers = #tpu.dot_dimension_numbers<[1], [0], [0], [1], [0, 0, 1, 1], [], []>} : vector<16x32xbf16>, vector<32x64xbf16>, vector<16x64xf32> -> vector<16x64xf32>
    %c0_3 = arith.constant 0 : index
    %c0_4 = arith.constant 0 : index
    %4 = vector.load %arg3[%c0_3, %c0_4] : memref<1x64xf32, #tpu.memory_space<vmem>>, vector<1x64xf32>
    %5 = vector.broadcast %4 : vector<1x64xf32> to vector<16x64xf32>
    %6 = arith.addf %3, %5 : vector<16x64xf32>
    %cst_5 = arith.constant 0.000000e+00 : f32
    %7 = vector.broadcast %cst_5 : f32 to vector<16x64xf32>
    %8 = arith.maximumf %6, %7 : vector<16x64xf32>
    %9 = arith.truncf %8 : vector<16x64xf32> to vector<16x64xbf16>
    %c0_6 = arith.constant 0 : index
    %c0_7 = arith.constant 0 : index
    %10 = vector.load %arg4[%c0_6, %c0_7] : memref<64x32xbf16, #tpu.memory_space<vmem>>, vector<64x32xbf16>
    %cst_8 = arith.constant dense<0.000000e+00> : vector<16x32xf32>
    %11 = tpu.matmul %9, %10, %cst_8 {dimension_numbers = #tpu.dot_dimension_numbers<[1], [0], [0], [1], [0, 0, 1, 1], [], []>} : vector<16x64xbf16>, vector<64x32xbf16>, vector<16x32xf32> -> vector<16x32xf32>
    %c0_9 = arith.constant 0 : index
    %c0_10 = arith.constant 0 : index
    %12 = vector.load %arg5[%c0_9, %c0_10] : memref<1x32xf32, #tpu.memory_space<vmem>>, vector<1x32xf32>
    %13 = vector.broadcast %12 : vector<1x32xf32> to vector<16x32xf32>
    %14 = arith.addf %11, %13 : vector<16x32xf32>
    %15 = arith.addf %0, %14 : vector<16x32xf32>
    %cst_11 = arith.constant dense<0.000000e+00> : vector<16xf32>
    %16 = vector.multi_reduction <add>, %15, %cst_11 [1] : vector<16x32xf32> to vector<16xf32>
    %17 = vector.shape_cast %16 : vector<16xf32> to vector<16x1xf32>
    %cst_12 = arith.constant 3.200000e+01 : f32
    %18 = vector.broadcast %cst_12 : f32 to vector<16x1xf32>
    %19 = arith.divf %17, %18 : vector<16x1xf32>
    %20 = vector.broadcast %19 : vector<16x1xf32> to vector<16x32xf32>
    %21 = arith.subf %15, %20 : vector<16x32xf32>
    %22 = arith.mulf %21, %21 : vector<16x32xf32>
    %cst_13 = arith.constant dense<0.000000e+00> : vector<16xf32>
    %23 = vector.multi_reduction <add>, %22, %cst_13 [1] : vector<16x32xf32> to vector<16xf32>
    %24 = vector.shape_cast %23 : vector<16xf32> to vector<16x1xf32>
    %cst_14 = arith.constant 3.200000e+01 : f32
    %25 = vector.broadcast %cst_14 : f32 to vector<16x1xf32>
    %26 = arith.divf %24, %25 : vector<16x1xf32>
    %27 = vector.broadcast %19 : vector<16x1xf32> to vector<16x32xf32>
    %28 = arith.subf %15, %27 : vector<16x32xf32>
    %cst_15 = arith.constant 9.99999974E-6 : f32
    %29 = vector.broadcast %cst_15 : f32 to vector<16x1xf32>
    %30 = arith.addf %26, %29 : vector<16x1xf32>
    %31 = math.rsqrt %30 : vector<16x1xf32>
    %32 = vector.broadcast %31 : vector<16x1xf32> to vector<16x32xf32>
    %33 = arith.mulf %28, %32 : vector<16x32xf32>
    %c0_16 = arith.constant 0 : index
    %c0_17 = arith.constant 0 : index
    %34 = vector.load %arg6[%c0_16, %c0_17] : memref<1x32xf32, #tpu.memory_space<vmem>>, vector<1x32xf32>
    %35 = vector.broadcast %34 : vector<1x32xf32> to vector<16x32xf32>
    %36 = arith.mulf %33, %35 : vector<16x32xf32>
    %c0_18 = arith.constant 0 : index
    %c0_19 = arith.constant 0 : index
    %37 = vector.load %arg7[%c0_18, %c0_19] : memref<1x32xf32, #tpu.memory_space<vmem>>, vector<1x32xf32>
    %38 = vector.broadcast %37 : vector<1x32xf32> to vector<16x32xf32>
    %39 = arith.addf %36, %38 : vector<16x32xf32>
    %c0_20 = arith.constant 0 : index
    %c0_21 = arith.constant 0 : index
    %40 = vector.load %arg8[%c0_20, %c0_21] : memref<16x32xf32, #tpu.memory_space<vmem>>, vector<16x32xf32>
    tpu.vector_store %arg8[%c0_20, %c0_21], %39 {strides = array<i32>} : memref<16x32xf32, #tpu.memory_space<vmem>>, vector<16x32xf32>,
    return
  }
  func.func @transform_0(%arg0: i32) -> (i32, i32) {
    %c0_i32 = arith.constant 0 : i32
    %c0_i32_0 = arith.constant 0 : i32
    return %arg0, %c0_i32 : i32, i32
  }
  func.func @transform_1(%arg0: i32) -> (i32, i32) {
    %c0_i32 = arith.constant 0 : i32
    %c0_i32_0 = arith.constant 0 : i32
    %c0_i32_1 = arith.constant 0 : i32
    return %c0_i32, %c0_i32_0 : i32, i32
  }
  func.func @transform_2(%arg0: i32) -> (i32, i32) {
    %c0_i32 = arith.constant 0 : i32
    %c0_i32_0 = arith.constant 0 : i32
    %c0_i32_1 = arith.constant 0 : i32
    return %c0_i32, %c0_i32_0 : i32, i32
  }
  func.func @transform_3(%arg0: i32) -> (i32, i32) {
    %c0_i32 = arith.constant 0 : i32
    %c0_i32_0 = arith.constant 0 : i32
    %c0_i32_1 = arith.constant 0 : i32
    return %c0_i32, %c0_i32_0 : i32, i32
  }
  func.func @transform_4(%arg0: i32) -> (i32, i32) {
    %c0_i32 = arith.constant 0 : i32
    %c0_i32_0 = arith.constant 0 : i32
    %c0_i32_1 = arith.constant 0 : i32
    return %c0_i32, %c0_i32_0 : i32, i32
  }
  func.func @transform_5(%arg0: i32) -> (i32, i32) {
    %c0_i32 = arith.constant 0 : i32
    %c0_i32_0 = arith.constant 0 : i32
    %c0_i32_1 = arith.constant 0 : i32
    return %c0_i32, %c0_i32_0 : i32, i32
  }
  func.func @transform_6(%arg0: i32) -> (i32, i32) {
    %c0_i32 = arith.constant 0 : i32
    %c0_i32_0 = arith.constant 0 : i32
    %c0_i32_1 = arith.constant 0 : i32
    return %c0_i32, %c0_i32_0 : i32, i32
  }
  func.func @transform_7(%arg0: i32) -> (i32, i32) {
    %c0_i32 = arith.constant 0 : i32
    %c0_i32_0 = arith.constant 0 : i32
    return %arg0, %c0_i32 : i32, i32
  }
}

module attributes {stable_mosaic.version = 11 : i64} {
  func.func @_linear_bias_kernel(%arg0: i32, %arg1: i32, %arg2: i32, %arg3: memref<16x32xf32, #tpu.memory_space<vmem>>, %arg4: memref<32x50xbf16, #tpu.memory_space<vmem>>, %arg5: memref<1x50xf32, #tpu.memory_space<vmem>>, %arg6: memref<16x50xf32, #tpu.memory_space<vmem>>, %arg7: memref<16x50xf32, #tpu.memory_space<vmem>>) attributes {dimension_semantics = [#tpu.dimension_semantics<parallel>, #tpu.dimension_semantics<parallel>, #tpu.dimension_semantics<arbitrary>], iteration_bounds = array<i64: 1, 1, 1>, scalar_prefetch = 0 : i64, scratch_operands = 1 : i64, tpu.core_type = #tpu.core_type<tc>, window_params = [{transform_indices = @transform_0, window_bounds = array<i64: 16, 32>}, {transform_indices = @transform_1, window_bounds = array<i64: 32, 50>}, {transform_indices = @transform_2, window_bounds = array<i64: 1, 50>}, {transform_indices = @transform_3, window_bounds = array<i64: 16, 50>}]} {
    %c0_i32 = arith.constant 0 : i32
    %0 = arith.cmpi eq, %arg2, %c0_i32 : i32
    %1 = arith.extui %0 : i1 to i32
    %c0_i32_0 = arith.constant 0 : i32
    %2 = arith.cmpi ne, %1, %c0_i32_0 : i32
    scf.if %2 {
      %cst_10 = arith.constant 0.000000e+00 : f32
      %13 = vector.broadcast %cst_10 : f32 to vector<16x50xf32>
      %c0_11 = arith.constant 0 : index
      %c0_12 = arith.constant 0 : index
      %14 = vector.load %arg7[%c0_11, %c0_12] : memref<16x50xf32, #tpu.memory_space<vmem>>, vector<16x50xf32>
      tpu.vector_store %arg7[%c0_11, %c0_12], %13 {strides = array<i32>} : memref<16x50xf32, #tpu.memory_space<vmem>>, vector<16x50xf32>,
    } else {
    }
    %c0 = arith.constant 0 : index
    %c0_1 = arith.constant 0 : index
    %3 = vector.load %arg7[%c0, %c0_1] : memref<16x50xf32, #tpu.memory_space<vmem>>, vector<16x50xf32>
    %c0_2 = arith.constant 0 : index
    %c0_3 = arith.constant 0 : index
    %4 = vector.load %arg3[%c0_2, %c0_3] : memref<16x32xf32, #tpu.memory_space<vmem>>, vector<16x32xf32>
    %5 = arith.truncf %4 : vector<16x32xf32> to vector<16x32xbf16>
    %c0_4 = arith.constant 0 : index
    %c0_5 = arith.constant 0 : index
    %6 = vector.load %arg4[%c0_4, %c0_5] : memref<32x50xbf16, #tpu.memory_space<vmem>>, vector<32x50xbf16>
    %cst = arith.constant dense<0.000000e+00> : vector<16x50xf32>
    %7 = tpu.matmul %5, %6, %cst {dimension_numbers = #tpu.dot_dimension_numbers<[1], [0], [0], [1], [0, 0, 1, 1], [], []>} : vector<16x32xbf16>, vector<32x50xbf16>, vector<16x50xf32> -> vector<16x50xf32>
    %8 = arith.addf %3, %7 : vector<16x50xf32>
    %c0_6 = arith.constant 0 : index
    %c0_7 = arith.constant 0 : index
    %9 = vector.load %arg7[%c0_6, %c0_7] : memref<16x50xf32, #tpu.memory_space<vmem>>, vector<16x50xf32>
    tpu.vector_store %arg7[%c0_6, %c0_7], %8 {strides = array<i32>} : memref<16x50xf32, #tpu.memory_space<vmem>>, vector<16x50xf32>,
    %c0_i32_8 = arith.constant 0 : i32
    %10 = arith.cmpi eq, %arg2, %c0_i32_8 : i32
    %11 = arith.extui %10 : i1 to i32
    %c0_i32_9 = arith.constant 0 : i32
    %12 = arith.cmpi ne, %11, %c0_i32_9 : i32
    scf.if %12 {
      %c0_10 = arith.constant 0 : index
      %c0_11 = arith.constant 0 : index
      %13 = vector.load %arg7[%c0_10, %c0_11] : memref<16x50xf32, #tpu.memory_space<vmem>>, vector<16x50xf32>
      %c0_12 = arith.constant 0 : index
      %c0_13 = arith.constant 0 : index
      %14 = vector.load %arg5[%c0_12, %c0_13] : memref<1x50xf32, #tpu.memory_space<vmem>>, vector<1x50xf32>
      %15 = vector.broadcast %14 : vector<1x50xf32> to vector<16x50xf32>
      %16 = arith.addf %13, %15 : vector<16x50xf32>
      %c0_14 = arith.constant 0 : index
      %c0_15 = arith.constant 0 : index
      %17 = vector.load %arg6[%c0_14, %c0_15] : memref<16x50xf32, #tpu.memory_space<vmem>>, vector<16x50xf32>
      tpu.vector_store %arg6[%c0_14, %c0_15], %16 {strides = array<i32>} : memref<16x50xf32, #tpu.memory_space<vmem>>, vector<16x50xf32>,
    } else {
    }
    return
  }
  func.func @transform_0(%arg0: i32, %arg1: i32, %arg2: i32) -> (i32, i32) {
    %c0_i32 = arith.constant 0 : i32
    return %arg0, %arg2 : i32, i32
  }
  func.func @transform_1(%arg0: i32, %arg1: i32, %arg2: i32) -> (i32, i32) {
    %c0_i32 = arith.constant 0 : i32
    return %arg2, %arg1 : i32, i32
  }
  func.func @transform_2(%arg0: i32, %arg1: i32, %arg2: i32) -> (i32, i32) {
    %c0_i32 = arith.constant 0 : i32
    %c0_i32_0 = arith.constant 0 : i32
    return %c0_i32, %arg1 : i32, i32
  }
  func.func @transform_3(%arg0: i32, %arg1: i32, %arg2: i32) -> (i32, i32) {
    %c0_i32 = arith.constant 0 : i32
    return %arg0, %arg1 : i32, i32
  }
}

</mosaic_0001>

<bundles_post_ra>
// kernel: decoder_forward.13
= control target key start
LH: loop header
LB: loop body
LE: loop exit
PB: predicated region body
PF: predicated region fallthrough
CT: control target
= control target key end

     0   :  { %v172_v1 = vmov 0.0   ;;  %vm173_vm0 = vmmov 0   ;;  %vm20_vm1 = vcmask 408576   ;;  %s230_s0 = inlined_call_operand.vmem [shape: f32[16,32], index: 0, kind: input, shape index: {}]   ;;  %s231_s1 = inlined_call_operand.vmem [shape: bf16[32,50], index: 1, kind: input, shape index: {}]   ;;  %s232_s2 = inlined_call_operand.vmem [shape: f32[1,50], index: 2, kind: input, shape index: {}]   ;;  %s233_s3 = inlined_call_operand.hbm [shape: f32[16,50], index: 3, kind: output, shape index: {}]  }
   0x1   :  { %v146_v0 = vld [vmem:[%s231_s1] sm:$0xff]   ;;  %133 = vmatprep.subr.bf16.mxu0 %v172_v1  ;;  %v147_v2 = vld [vmem:[%s231_s1 + $0x8] sm:$0xff]   ;;  %137 = vmatprep.mubr.msk.bf16.mxu0 %vm173_vm0, %v172_v1 }
   0x2   :  { %134 = vmatpush3.bf16.msra.mxu0 %v146_v0  ;;  %v25_v3 = vld [vmem:[%s230_s0] sm:$0xff]  ;;  %v26_v4 = vld [vmem:[%s230_s0 + $0x8] sm:$0xff] }
   0x3   :  { %8 = vsyncpa [#allocation4], 0  ;;  %135 = vmatprep.subr.bf16.mxu0 %v172_v1  ;;  %21 = vst.msk [vmem:[#allocation2] sm:$0xff] %vm20_vm1, %v172_v1  ;;  %v27_v5 = vpack.c.bf16 %v26_v4, %v25_v3  ;;  %vm44_vm2 = vcmask 261120   ;;  %v129_v14 = vld [vmem:[%s232_s2] ss:$0 sm:$0xff] }
   0x4   :  { %22 = vst.msk [vmem:[#allocation2 + $0x8] sm:$0xff] %vm20_vm1, %v172_v1  ;;  %s174_s20 = smov [#allocation3]  }
   0x5   :  { %s115_s21 = sshll.u32 %s174_s20, 4  ;;  %s116_s21 = int_to_ptr.vmem [resolvable:$true] %s115_s21 }
   0x6   :  { %136 = vmatpush3.bf16.msra.mxu0 %v147_v2  ;;  %s148_s22 = scalar_lea.vmem %s116_s21, 256  ;;  %p153_p1 = scmp.lt.s32.totalorder %s116_s21, %s116_s21 }
   0x7   :  { %p149_p0 = scmp.ne.s32.totalorder %s116_s21, %s148_s22  ;;  %p154_p2 = scmp.lt.s32.totalorder %s148_s22, %s148_s22 }
   0x9   :  { %138 = vmatmul.mubr.msk.bf16.vlgmr.msra.gmra.mrb[0].mxu0 %vm44_vm2, %v27_v5  ;;  %p155_p3 = por %p154_p2, %p153_p1 }
   0xa   :  { %v23_v6 = vld [vmem:[#allocation2] sm:$0xff] }
   0xb   :  { %v24_v8 = vld [vmem:[#allocation2 + $0x8] sm:$0xff]  ;;  %p156_p4 = pnand %p155_p3, %p149_p0 }
  0xdc   :  { %v82_v7 = vpop.f32.mrb[0].mxu0 }
  0xdd   :  { %v89_v9 = vadd.f32 %v82_v7, %v23_v6  ;;  %v139_v10 = vpop.f32.mrb[1].mxu0 }
  0xde   :  { %v85_v11 = vpop.f32.mrb[2].mxu0 }
  0xdf   :  { %92 = vst.msk [vmem:[#allocation2] sm:$0xff] %vm20_vm1, %v89_v9  ;;  %v90_v12 = vadd.f32 %v85_v11, %v24_v8  ;;  %v140_v13 = vpop.f32.mrb[3].mxu0 }
  0xe1   :  { %93 = vst.msk [vmem:[#allocation2 + $0x8] sm:$0xff] %vm20_vm1, %v90_v12 }
  0xe6   :  { %v97_v15 = vld [vmem:[#allocation2] sm:$0xff] }
  0xe7   :  { %v106_v16 = vadd.f32 %v129_v14, %v97_v15 }
  0xe8   :  { %v98_v17 = vld [vmem:[#allocation2 + $0x8] sm:$0xff] }
  0xe9   :  { %v107_v18 = vadd.f32 %v129_v14, %v98_v17  ;;  %108 = vst.msk [vmem:[#allocation3] sm:$0xff] %vm20_vm1, %v106_v16 }
  0xeb   :  { %109 = vst.msk [vmem:[#allocation3 + $0x8] sm:$0xff] %vm20_vm1, %v107_v18 }
  0xec   :  { %159 = shalt.err (!%p156_p4)
}
  0xed   :  { %s160_s24 = scalar_lea.hbm %s233_s3, 256 }
  0xee   :  { %p161_p5 = scmp.ne.s32.totalorder %s233_s3, %s160_s24  ;;  %p164_p6 = scmp.lt.u32.totalorder %s160_s24, %s233_s3 }
  0xf0   :  { %p166_p7 = pnand %p164_p6, %p161_p5 }
  0xf2   :  { %169 = shalt.err (!%p166_p7)
}
  0xf3   :  { %s175_s29 = smov 128   ;;  %s176_s30 = smov 8  }
  0xf4   :  { %121 = dma.vmem_to_hbm [thread:$0]  %s116_s21, 256, %s233_s3, [#allocation4], %s175_s29, %s175_s29, %s176_s30  }
  0xf5   :  { %170 = dma.done.wait [#allocation4], 256  }
  0xf6   :  { %171 = vsyncadd [#allocation4], 4294967040 }
  0xf7   :  { %125 = vsyncpa [#allocation4], 1 }

// kernel: decoder_forward.9
= control target key start
LH: loop header
LB: loop body
LE: loop exit
PB: predicated region body
PF: predicated region fallthrough
CT: control target
= control target key end

     0   :  { %v290_v0 = vmov 0.0   ;;  %vm291_vm0 = vmmov 0   ;;  %vm53_vm1 = vcmask 261120   ;;  %vm140_vm2 = vcmask 523264   ;;  %s381_s1 = inlined_call_operand.vmem [shape: bf16[32,64], index: 1, kind: input, shape index: {}]   ;;  %s382_s0 = inlined_call_operand.vmem [shape: f32[16,32], index: 0, kind: input, shape index: {}]   ;;  %s383_s3 = inlined_call_operand.vmem [shape: bf16[64,32], index: 3, kind: input, shape index: {}]   ;;  %s384_s2 = inlined_call_operand.vmem [shape: f32[1,64], index: 2, kind: input, shape index: {}]   ;;  %s385_s4 = inlined_call_operand.vmem [shape: f32[1,32], index: 4, kind: input, shape index: {}]   ;;  %s386_s5 = inlined_call_operand.vmem [shape: f32[1,32], index: 5, kind: input, shape index: {}]   ;;  %s387_s6 = inlined_call_operand.vmem [shape: f32[1,32], index: 6, kind: input, shape index: {}]   ;;  %s388_s7 = inlined_call_operand.vmem [shape: f32[16,32], index: 7, kind: output, shape index: {}]  }
   0x1   :  { %258 = vmatprep.subr.bf16.mxu0 %v290_v0  ;;  %v280_v1 = vld [vmem:[%s381_s1] sm:$0xff]   ;;  %262 = vmatprep.mubr.msk.bf16.mxu0 %vm291_vm0, %v290_v0  ;;  %v281_v2 = vld [vmem:[%s381_s1 + $0x8] sm:$0xff]   ;;  %v284_v8 = vld [vmem:[%s383_s3 + $0x10] sm:$0xff]  }
   0x2   :  { %266 = vmatprep.subr.bf16.mxu1 %v290_v0  ;;  %274 = vmatprep.mubr.msk.bf16.mxu1 %vm291_vm0, %v290_v0  ;;  %v27_v3 = vld [vmem:[%s382_s0] sm:$0xff]  ;;  %v28_v4 = vld [vmem:[%s382_s0 + $0x8] sm:$0xff]  ;;  %v285_v9 = vld [vmem:[%s383_s3 + $0x18] sm:$0xff]  }
   0x3   :  { %259 = vmatpush3.bf16.msra.mxu0 %v280_v1  ;;  %v282_v5 = vld [vmem:[%s383_s3] sm:$0xff]   ;;  %v283_v6 = vld [vmem:[%s383_s3 + $0x8] sm:$0xff]   ;;  %v29_v7 = vpack.c.bf16 %v28_v4, %v27_v3 }
   0x4   :  { %260 = vmatprep.subr.bf16.mxu0 %v290_v0  ;;  %267 = vmatpush3.bf16.msra.mxu1 %v282_v5  ;;  %v238_v10 = vld [vmem:[%s384_s2] ss:$0 sm:$0xff] }
   0x5   :  { %268 = vmatprep.subr.bf16.mxu1 %v290_v0  ;;  %v242_v20 = vld [vmem:[%s385_s4] ss:$0 sm:$0xff] }
   0x6   :  { %v248_v48 = vld [vmem:[%s386_s5] ss:$0 sm:$0xff] }
   0x7   :  { %261 = vmatpush3.bf16.msra.mxu0 %v281_v2  ;;  %v249_v50 = vld [vmem:[%s387_s6] ss:$0 sm:$0xff] }
   0x8   :  { %269 = vmatpush3.bf16.msra.mxu1 %v283_v6 }
   0x9   :  { %270 = vmatprep.subr.bf16.mxu1 %v290_v0 }
   0xa   :  { %263 = vmatmul.mubr.msk.bf16.vlgmr.msra.gmra.mrb[0].mxu0 %vm53_vm1, %v29_v7 }
   0xc   :  { %271 = vmatpush3.bf16.msra.mxu1 %v284_v8 }
   0xd   :  { %272 = vmatprep.subr.bf16.mxu1 %v290_v0 }
  0x10   :  { %273 = vmatpush3.bf16.msra.mxu1 %v285_v9 }
  0xdd   :  { %v91_v11 = vpop.f32.mrb[0].mxu0 }
  0xde   :  { %v92_v12 = vadd.f32 %v238_v10, %v91_v11  ;;  %v264_v13 = vpop.f32.mrb[1].mxu0 }
  0xdf   :  { %v94_v14 = vpop.f32.mrb[2].mxu0 }
  0xe0   :  { %v95_v15 = vadd.f32 %v238_v10, %v94_v14  ;;  %v265_v16 = vpop.f32.mrb[3].mxu0  ;;  %v98_v17 = vmax.f32 %v92_v12, 0.0 }
  0xe2   :  { %v99_v18 = vmax.f32 %v95_v15, 0.0 }
  0xe4   :  { %v100_v19 = vpack.c.bf16 %v99_v18, %v98_v17 }
  0xe6   :  { %275 = vmatmul.mubr.msk.bf16.vlgmr.msra.gmra.mrb[0].mxu1 %vm140_vm2, %v100_v19 }
 0x1b9   :  { %v178_v21 = vpop.f32.mrb[0].mxu1 }
 0x1ba   :  { %v179_v22 = vadd.f32 %v242_v20, %v178_v21  ;;  %v276_v23 = vpop.f32.mrb[1].mxu1 }
 0x1bb   :  { %v181_v24 = vpop.f32.mrb[2].mxu1 }
 0x1bc   :  { %v182_v25 = vadd.f32 %v242_v20, %v181_v24  ;;  %v277_v26 = vpop.f32.mrb[3].mxu1  ;;  %v185_v27 = vadd.f32 %v179_v22, %v27_v3 }
 0x1be   :  { %v187_v28 = vsel %vm53_vm1, %v185_v27, 0.0  ;;  %v186_v29 = vadd.f32 %v182_v25, %v28_v4 }
 0x1bf   :  { %188 = vadd.xlane.f32.xlu0 %v187_v28 }
 0x1c0   :  { %v190_v30 = vsel %vm53_vm1, %v186_v29, 0.0 }
 0x1c3   :  { %191 = vadd.xlane.f32.xlu0 %v190_v30 }
 0x24c   :  { %v189_v31 = vpop.xlane.xlu0 %188 }
 0x24d   :  { %v194_v32 = vmul.f32 0.03125, %v189_v31 }
 0x24f   :  { %v196_v33 = vsub.f32 %v185_v27, %v194_v32 }
 0x250   :  { %v192_v34 = vpop.xlane.xlu0 %191 }
 0x251   :  { %v195_v35 = vmul.f32 0.03125, %v192_v34  ;;  %v198_v36 = vmul.f32 %v196_v33, %v196_v33 }
 0x253   :  { %v197_v37 = vsub.f32 %v186_v29, %v195_v35  ;;  %v200_v38 = vsel %vm53_vm1, %v198_v36, 0.0 }
 0x254   :  { %201 = vadd.xlane.f32.xlu1 %v200_v38 }
 0x255   :  { %v199_v39 = vmul.f32 %v197_v37, %v197_v37 }
 0x257   :  { %v203_v40 = vsel %vm53_vm1, %v199_v39, 0.0 }
 0x258   :  { %204 = vadd.xlane.f32.xlu1 %v203_v40 }
 0x2e1   :  { %v202_v41 = vpop.xlane.xlu1 %201 }
 0x2e2   :  { %v206_v42 = vmul.f32 0.03125, %v202_v41 }
 0x2e4   :  { %v208_v43 = vadd.f32 1e-05, %v206_v42 }
 0x2e5   :  { %v205_v44 = vpop.xlane.xlu1 %204 }
 0x2e6   :  { %286 = vrsqrt.f32 %v208_v43  ;;  %v207_v45 = vmul.f32 0.03125, %v205_v44 }
 0x2e8   :  { %v209_v46 = vadd.f32 1e-05, %v207_v45 }
 0x2ea   :  { %288 = vrsqrt.f32 %v209_v46 }
 0x2f0   :  { %v287_v47 = vpop.eup %286 }
 0x2f1   :  { %v212_v49 = vmul.f32 %v287_v47, %v196_v33 }
 0x2f3   :  { %v221_v51 = vmul.f32 %v248_v48, %v212_v49 }
 0x2f4   :  { %v289_v52 = vpop.eup %288 }
 0x2f5   :  { %v230_v53 = vadd.f32 %v249_v50, %v221_v51  ;;  %v213_v54 = vmul.f32 %v289_v52, %v197_v37 }
 0x2f7   :  { %232 = vst.msk [vmem:[%s388_s7] sm:$0xff] %vm53_vm1, %v230_v53  ;;  %v222_v55 = vmul.f32 %v248_v48, %v213_v54 }
 0x2f9   :  { %v231_v56 = vadd.f32 %v249_v50, %v222_v55 }
 0x2fb   :  { %233 = vst.msk [vmem:[%s388_s7 + $0x8] sm:$0xff] %vm53_vm1, %v231_v56 }

// kernel: decoder_forward.7
= control target key start
LH: loop header
LB: loop body
LE: loop exit
PB: predicated region body
PF: predicated region fallthrough
CT: control target
= control target key end

     0   :  { %s1415_s17 = smov 0   ;;  %s1558_s0 = inlined_call_operand.vmem [shape: f32[2,8,32], index: 0, kind: input, shape index: {}, may-alias: {0,1}]   ;;  %s1559_s1 = inlined_call_operand.vmem [shape: f32[2,8,32], index: 1, kind: input, shape index: {}, may-alias: {0,1}]   ;;  %s1560_s2 = inlined_call_operand.vmem [shape: bf16[32,32], index: 2, kind: input, shape index: {}]   ;;  %s1561_s3 = inlined_call_operand.vmem [shape: f32[1,32], index: 3, kind: input, shape index: {}]   ;;  %s1562_s4 = inlined_call_operand.vmem [shape: bf16[32,64], index: 4, kind: input, shape index: {}]   ;;  %s1563_s5 = inlined_call_operand.vmem [shape: f32[1,64], index: 5, kind: input, shape index: {}]   ;;  %s1564_s6 = inlined_call_operand.vmem [shape: bf16[32,32], index: 6, kind: input, shape index: {}]   ;;  %s1565_s7 = inlined_call_operand.vmem [shape: f32[1,32], index: 7, kind: input, shape index: {}]   ;;  %s1566_s8 = inlined_call_operand.vmem [shape: f32[1,32], index: 8, kind: input, shape index: {}]   ;;  %s1567_s9 = inlined_call_operand.vmem [shape: f32[1,32], index: 9, kind: input, shape index: {}]   ;;  %s1568_s10 = inlined_call_operand.vmem [shape: f32[8,8], index: 10, kind: input, shape index: {}]   ;;  %s1569_s11 = inlined_call_operand.vmem [shape: f32[2,8,32], index: 11, kind: output, shape index: {}]  }
   0x1 LB: > { %s1162_s18 = sadd.s32 4294967295, %s1341_s17   ;;  %p1166_p0 = scmp.ge.s32.totalorder %s1341_s17, 1  ;;  %s1341_s17 = sphi %s1415_s17, %s21_s17  }
   0x2   : > { %p345_p1 = scmp.lt.s32.totalorder %s1341_s17, 3 }
   0x4   : > { %p346_p2 = pnand %p1166_p0, %p345_p1 }
   0x5   : > { %v1311_v0 = vld [vmem:[%s1562_s4] sm:$0xff] (!%p346_p2)   ;;  %v1343_v1 = vmov (!%p346_p2), 0.0   ;;  %v1313_v3 = vld [vmem:[%s1562_s4 + $0x8] sm:$0xff] (!%p346_p2)   ;;  %vm1344_vm0 = vmmov (!%p346_p2), 0   ;;  %p387_p3 = scmp.lt.s32.totalorder (!%p346_p2), %s1162_s18, 1  ;;  %vm426_vm1 = vcmask (!%p346_p2), 261120  }
   0x6   : > { %349 = sbr.rel (%p346_p2) target bundleno = 1773 (0x6ed), region = 64  ;;  %1227 = vmatprep.subr.bf16.mxu1 (!%p346_p2), %v1343_v1  ;;  %1219 = vmatprep.subr.bf16.mxu0 (!%p346_p2), %v1343_v1  ;;  %v1312_v2 = vld [vmem:[%s1560_s2] sm:$0xff] (!%p346_p2)   ;;  %v1314_v4 = vld [vmem:[%s1560_s2 + $0x8] sm:$0xff] (!%p346_p2)   ;;  %vm541_vm2 = vcmask (!%p346_p2), 64512   ;;  %s1345_s20 = smov (!%p346_p2), 112   ;;  %vm606_vm3 = vcmask (!%p346_p2), 1043456  }
   0x7   : > { %1228 = vmatpush3.bf16.msra.mxu1 (!%p346_p2), %v1311_v0  ;;  %1231 = vmatprep.mubr.msk.bf16.mxu1 (!%p346_p2), %vm1344_vm0, %v1343_v1  ;;  %v1174_v9 = vld [vmem:[%s1563_s5] ss:$0 sm:$0xff] (!%p346_p2)  ;;  %s1346_s21 = smov (!%p346_p2), 120   ;;  %s1347_s22 = smov (!%p346_p2), 104   ;;  %vm994_vm4 = vcmask (!%p346_p2), 130048   ;;  %vm996_vm5 = vcmask (!%p346_p2), 195584  }
   0x8   : > { %1220 = vmatpush3.bf16.msra.mxu0 (!%p346_p2), %v1312_v2  ;;  %1229 = vmatprep.subr.bf16.mxu1 (!%p346_p2), %v1343_v1  ;;  %v1170_v10 = vld [vmem:[%s1561_s3] ss:$0 sm:$0xff] (!%p346_p2)  ;;  %s1348_s25 = smov (!%p346_p2), 96   ;;  %s1349_s26 = smov (!%p346_p2), 80  }
   0x9   : > { %1221 = vmatprep.subr.bf16.mxu0 (!%p346_p2), %v1343_v1  ;;  %1223 = vmatprep.mubr.msk.bf16.mxu0 (!%p346_p2), %vm1344_vm0, %v1343_v1  ;;  %v540_v34 = vld [vmem:[%s1568_s10] sm:$0xff] (!%p346_p2)  ;;  %s1350_s28 = smov (!%p346_p2), 72   ;;  %s1351_s29 = smov (!%p346_p2), 88  }
   0xa   : > { %s1352_s13 = smov (!%p346_p2), 8   ;;  %s1353_s16 = smov (!%p346_p2), 16  }
   0xb   : > { %1230 = vmatpush3.bf16.msra.mxu1 (!%p346_p2), %v1313_v3 }
   0xc   : > { %1222 = vmatpush3.bf16.msra.mxu0 (!%p346_p2), %v1314_v4  ;;  %1241 = vmatprep.subr.bf16.mxu1 (!%p346_p2), %v1343_v1 }
   0xd   : > { %s1571_s18 = smov (!%p387_p3, %s1162_s18), 1  ;;  %1235 = vmatprep.subr.bf16.mxu0 %v1343_v1 }
   0xe   : > { %s1443_s27 = sshll.u32 %s1571_s18, 3  ;;  %s1354_s18 = smov 24  }
   0xf   : > { %s394_s30 = scalar_lea.vmem %s1559_s1, %s1443_s27  ;;  %s390_s14 = scalar_lea.vmem %s1558_s0, %s1443_s27 }
  0x10   : > { %v401_v5 = vld [vmem:[%s394_s30] sm:$0xff] }
  0x11   : > { %v471_v6 = vpack.c.bf16 %v401_v5, %v401_v5  ;;  %v1455_v7 = vld [vmem:[%s390_s14] sm:$0xff] }
  0x12   : > { %v402_v8 = vpack.c.bf16 %v1455_v7, %v1455_v7 }
  0x13   : > { %1232 = vmatmul.mubr.msk.bf16.vlgmr.msra.gmra.mrb[0].mxu1 %vm426_vm1, %v471_v6 }
  0x14   : > { %1224 = vmatmul.mubr.msk.bf16.vlgmr.msra.gmra.mrb[0].mxu0 %vm426_vm1, %v402_v8  ;;  %1243 = vmatprep.mubr.msk.bf16.mxu1 %vm1344_vm0, %v1343_v1 }
  0x15   : > { %1237 = vmatprep.mubr.msk.bf16.mxu0 %vm1344_vm0, %v1343_v1 }
  0xe6   : > { %v532_v11 = vpop.f32.mrb[0].mxu1 }
  0xe7   : > { %v533_v12 = vadd.f32 %v1174_v9, %v532_v11  ;;  %v1233_v13 = vpop.f32.mrb[1].mxu1  ;;  %v464_v14 = vpop.f32.mrb[0].mxu0 }
  0xe8   : > { %v465_v15 = vadd.f32 %v1170_v10, %v464_v14  ;;  %v535_v16 = vpop.f32.mrb[2].mxu1  ;;  %v1225_v17 = vpop.f32.mrb[1].mxu0 }
  0xe9   : > { %v1471_v18 = vpack.c.bf16 %v533_v12, %v533_v12  ;;  %v1234_v19 = vpop.f32.mrb[3].mxu1  ;;  %v467_v20 = vpop.f32.mrb[2].mxu0 }
  0xea   : > { %v470_v21 = vmul.f32 0.35355338, %v465_v15  ;;  %v1226_v22 = vpop.f32.mrb[3].mxu0 }
  0xeb   : > { %763 = vrot.lane.b32.xlu1 %v1471_v18, %s1345_s20  ;;  %653 = vrot.lane.b32.xlu0 %v1471_v18, %s1346_s21  ;;  %v546_v23 = vsel %vm541_vm2, %v1471_v18, 0 }
  0xec   : > { %v538_v24 = vpack.c.bf16 %v470_v21, %v470_v21  ;;  %1236 = vmatpush3.bf16.xpose.msra.mxu0 %v546_v23 }
  0xed   : > { %1247 = vmatprep.subr.bf16.mxu0 %v1343_v1 }
  0xef   : > { %761 = vrot.lane.b32.xlu1 %v538_v24, %s1345_s20  ;;  %651 = vrot.lane.b32.xlu0 %v538_v24, %s1346_s21 }
  0xf3   : > { %871 = vrot.lane.b32.xlu1 %v538_v24, %s1347_s22  ;;  %873 = vrot.lane.b32.xlu0 %v1471_v18, %s1347_s22 }
  0xf4   : > { %1238 = vmatmul.mubr.msk.bf16.vlgmr.msra.gmra.mrb[4].mxu0 %vm541_vm2, %v538_v24 }
  0xf5   : > { %1249 = vmatprep.mubr.msk.bf16.mxu0 %vm1344_vm0, %v1343_v1 }
 0x15d   : > { %v654_v25 = vpop.permute.xlu0 %653  ;;  %v764_v27 = vpop.permute.xlu1 %763 }
 0x15e   : > { %v659_v26 = vsel %vm541_vm2, %v654_v25, 0  ;;  %v769_v29 = vsel %vm541_vm2, %v764_v27, 0 }
 0x15f   : > { %1248 = vmatpush3.bf16.xpose.msra.mxu0 %v659_v26 }
 0x160   : > { %1259 = vmatprep.subr.bf16.mxu0 %v1343_v1 }
 0x161   : > { %v652_v28 = vpop.permute.xlu0 %651  ;;  %v762_v31 = vpop.permute.xlu1 %761 }
 0x165   : > { %v874_v30 = vpop.permute.xlu0 %873  ;;  %v872_v33 = vpop.permute.xlu1 %871 }
 0x166   : > { %1250 = vmatmul.mubr.msk.bf16.vlgmr.msra.gmra.mrb[8].mxu0 %vm541_vm2, %v652_v28  ;;  %v879_v32 = vsel %vm541_vm2, %v874_v30, 0 }
 0x167   : > { %1260 = vmatpush3.bf16.xpose.msra.mxu0 %v769_v29  ;;  %1261 = vmatprep.mubr.msk.bf16.mxu0 %vm1344_vm0, %v1343_v1 }
 0x168   : > { %1271 = vmatprep.subr.bf16.mxu0 %v1343_v1 }
 0x16e   : > { %1262 = vmatmul.mubr.msk.bf16.vlgmr.msra.gmra.mrb[12].mxu0 %vm541_vm2, %v762_v31 }
 0x16f   : > { %1272 = vmatpush3.bf16.xpose.msra.mxu0 %v879_v32  ;;  %1273 = vmatprep.mubr.msk.bf16.mxu0 %vm1344_vm0, %v1343_v1 }
 0x170   : > { %1283 = vmatprep.subr.bf16.mxu0 %v1343_v1 }
 0x176   : > { %1274 = vmatmul.mubr.msk.bf16.vlgmr.msra.gmra.mrb[16].mxu0 %vm541_vm2, %v872_v33 }
 0x177   : > { %1287 = vmatprep.mubr.msk.bf16.mxu0 %vm1344_vm0, %v1343_v1 }
 0x1c7   : > { %v582_v35 = vpop.f32.mrb[4].mxu0 }
 0x1c8   : > { %v583_v36 = vadd.f32 %v582_v35, %v540_v34  ;;  %v1239_v37 = vpop.f32.mrb[5].mxu0 }
 0x1c9   : > { %v585_v38 = vpop.f32.mrb[6].mxu0 }
 0x1ca   : > { %v1240_v39 = vpop.f32.mrb[7].mxu0  ;;  %v588_v40 = vsel %vm541_vm2, %v583_v36, -inf }
 0x1cb   : > { %589 = vmax.xlane.f32.xlu0 %v588_v40 }
 0x239   : > { %v695_v41 = vpop.f32.mrb[8].mxu0 }
 0x23a   : > { %v696_v42 = vadd.f32 %v695_v41, %v540_v34  ;;  %v1251_v43 = vpop.f32.mrb[9].mxu0 }
 0x23b   : > { %v698_v44 = vpop.f32.mrb[10].mxu0 }
 0x23c   : > { %v1252_v45 = vpop.f32.mrb[11].mxu0  ;;  %v701_v46 = vsel %vm541_vm2, %v696_v42, -inf }
 0x23d   : > { %702 = vmax.xlane.f32.xlu1 %v701_v46  ;;  %v1315_v45 = vld [vmem:[%s1564_s6] sm:$0xff]  }
 0x23e   : > { %1284 = vmatpush3.bf16.msra.mxu0 %v1315_v45 }
 0x23f   : > { %1285 = vmatprep.subr.bf16.mxu0 %v1343_v1 }
 0x241   : > { %v805_v47 = vpop.f32.mrb[12].mxu0 }
 0x242   : > { %v806_v48 = vadd.f32 %v805_v47, %v540_v34  ;;  %v1263_v49 = vpop.f32.mrb[13].mxu0 }
 0x243   : > { %v808_v50 = vpop.f32.mrb[14].mxu0 }
 0x244   : > { %v1264_v51 = vpop.f32.mrb[15].mxu0  ;;  %v811_v52 = vsel %vm541_vm2, %v806_v48, -inf  ;;  %v1316_v50 = vld [vmem:[%s1564_s6 + $0x8] sm:$0xff]  }
 0x245   : > { %812 = vmax.xlane.f32.xlu0 %v811_v52  ;;  %1286 = vmatpush3.bf16.msra.mxu0 %v1316_v50 }
 0x249   : > { %v915_v53 = vpop.f32.mrb[16].mxu0 }
 0x24a   : > { %v916_v54 = vadd.f32 %v915_v53, %v540_v34  ;;  %v1275_v55 = vpop.f32.mrb[17].mxu0 }
 0x24b   : > { %v918_v56 = vpop.f32.mrb[18].mxu0 }
 0x24c   : > { %v1276_v57 = vpop.f32.mrb[19].mxu0  ;;  %v921_v58 = vsel %vm541_vm2, %v916_v54, -inf }
 0x24d   : > { %922 = vmax.xlane.f32.xlu0 %v921_v58 }
 0x258   : > { %v590_v59 = vpop.xlane.xlu0 %589 }
 0x259   : > { %v591_v60 = vsub.f32 %v583_v36, %v590_v59 }
 0x25b   : > { %v592_v61 = vmul.f32 1.442695, %v591_v60 }
 0x25d   : > { %1317 = vpow2.f32 %v592_v61 }
 0x267   : > { %v1318_v62 = vpop.eup %1317 }
 0x268   : > { %v594_v63 = vsel %vm541_vm2, %v1318_v62, 0.0 }
 0x269   : > { %595 = vadd.xlane.f32.xlu1 %v594_v63 }
 0x27a   : > { %601 = vrot.lane.b32.xlu1 %v1471_v18, %s1348_s25 }
 0x2ca   : > { %v703_v0 = vpop.xlane.xlu1 %702 }
 0x2cb   : > { %v704_v2 = vsub.f32 %v696_v42, %v703_v0 }
 0x2cd   : > { %v705_v3 = vmul.f32 1.442695, %v704_v2  ;;  %v1186_v2 = vld [vmem:[%s1565_s7] ss:$0 sm:$0xff] }
 0x2cf   : > { %1319 = vpow2.f32 %v705_v3 }
 0x2d2   : > { %v813_v4 = vpop.xlane.xlu0 %812 }
 0x2d3   : > { %v814_v5 = vsub.f32 %v806_v48, %v813_v4 }
 0x2d5   : > { %v815_v6 = vmul.f32 1.442695, %v814_v5 }
 0x2d7   : > { %1321 = vpow2.f32 %v815_v6 }
 0x2d9   : > { %v1320_v8 = vpop.eup %1319 }
 0x2da   : > { %v923_v9 = vpop.xlane.xlu0 %922  ;;  %v707_v10 = vsel %vm541_vm2, %v1320_v8, 0.0 }
 0x2db   : > { %v924_v11 = vsub.f32 %v916_v54, %v923_v9  ;;  %708 = vadd.xlane.f32.xlu0 %v707_v10 }
 0x2dd   : > { %v925_v12 = vmul.f32 1.442695, %v924_v11 }
 0x2df   : > { %1323 = vpow2.f32 %v925_v12 }
 0x2e1   : > { %v1322_v13 = vpop.eup %1321 }
 0x2e2   : > { %v817_v14 = vsel %vm541_vm2, %v1322_v13, 0.0 }
 0x2e3   : > { %818 = vadd.xlane.f32.xlu1 %v817_v14 }
 0x2e9   : > { %v1324_v15 = vpop.eup %1323 }
 0x2ea   : > { %v927_v16 = vsel %vm541_vm2, %v1324_v15, 0.0 }
 0x2eb   : > { %928 = vadd.xlane.f32.xlu0 %v927_v16 }
 0x2f4   : > { %823 = vrot.lane.b32.xlu1 %v1471_v18, %s1349_s26 }
 0x2f6   : > { %v596_v17 = vpop.xlane.xlu1 %595 }
 0x2f7   : > { %1325 = vrcp.f32 %v596_v17 }
 0x2f8   : > { %933 = vrot.lane.b32.xlu1 %v1471_v18, %s1350_s28  ;;  %s398_s28 = scalar_lea.vmem %s1569_s11, %s1443_s27 }
 0x2fa   : > { %v602_v19 = vpop.permute.xlu1 %601 }
 0x2fb   : > { %v608_v20 = vsel %vm606_vm3, %v602_v19, 0 }
 0x2fc   : > { %1242 = vmatpush3.bf16.msra.mxu1 %v608_v20 }
 0x2fd   : > { %1253 = vmatprep.subr.bf16.mxu1 %v1343_v1 }
 0x301   : > { %v1326_v21 = vpop.eup %1325  ;;  %713 = vrot.lane.b32.xlu0 %v1471_v18, %s1351_s29 }
 0x302   : > { %v598_v22 = vmul.f32 %v1326_v21, %v1318_v62 }
 0x304   : > { %v599_v23 = vpack.c.bf16 %v598_v22, %v598_v22  ;;  %v1191_v22 = vld [vmem:[%s1567_s9] ss:$0 sm:$0xff] }
 0x306   : > { %1244 = vmatmul.mubr.msk.bf16.vlgmr.msra.gmra.mrb[4].mxu1 %vm541_vm2, %v599_v23 }
 0x307   : > { %1255 = vmatprep.mubr.msk.bf16.mxu1 %vm1344_vm0, %v1343_v1 }
 0x368   : > { %v709_v24 = vpop.xlane.xlu0 %708 }
 0x369   : > { %1327 = vrcp.f32 %v709_v24 }
 0x370   : > { %v819_v25 = vpop.xlane.xlu1 %818 }
 0x371   : > { %1329 = vrcp.f32 %v819_v25 }
 0x373   : > { %v1328_v26 = vpop.eup %1327 }
 0x374   : > { %v711_v28 = vmul.f32 %v1328_v26, %v1320_v8  ;;  %v824_v31 = vpop.permute.xlu1 %823 }
 0x375   : > { %v829_v33 = vsel %vm606_vm3, %v824_v31, 0 }
 0x376   : > { %v712_v18 = vpack.c.bf16 %v711_v28, %v711_v28 }
 0x378   : > { %v929_v27 = vpop.xlane.xlu0 %928  ;;  %v934_v35 = vpop.permute.xlu1 %933 }
 0x379   : > { %1331 = vrcp.f32 %v929_v27  ;;  %v939_v38 = vsel %vm606_vm3, %v934_v35, 0 }
 0x37b   : > { %v1330_v32 = vpop.eup %1329 }
 0x37c   : > { %v714_v29 = vpop.permute.xlu0 %713  ;;  %v821_v34 = vmul.f32 %v1330_v32, %v1322_v13 }
 0x37d   : > { %v719_v30 = vsel %vm606_vm3, %v714_v29, 0 }
 0x37e   : > { %1254 = vmatpush3.bf16.msra.mxu1 %v719_v30  ;;  %v822_v36 = vpack.c.bf16 %v821_v34, %v821_v34 }
 0x37f   : > { %1265 = vmatprep.subr.bf16.mxu1 %v1343_v1 }
 0x381   : > { %1256 = vmatmul.mubr.msk.bf16.vlgmr.msra.gmra.mrb[8].mxu1 %vm541_vm2, %v712_v18 }
 0x382   : > { %1266 = vmatpush3.bf16.msra.mxu1 %v829_v33  ;;  %1267 = vmatprep.mubr.msk.bf16.mxu1 %vm1344_vm0, %v1343_v1 }
 0x383   : > { %1277 = vmatprep.subr.bf16.mxu1 %v1343_v1  ;;  %v1332_v37 = vpop.eup %1331 }
 0x384   : > { %v931_v39 = vmul.f32 %v1332_v37, %v1324_v15 }
 0x386   : > { %v932_v40 = vpack.c.bf16 %v931_v39, %v931_v39 }
 0x389   : > { %1268 = vmatmul.mubr.msk.bf16.vlgmr.msra.gmra.mrb[12].mxu1 %vm541_vm2, %v822_v36 }
 0x38a   : > { %1278 = vmatpush3.bf16.msra.mxu1 %v939_v38  ;;  %1279 = vmatprep.mubr.msk.bf16.mxu1 %vm1344_vm0, %v1343_v1 }
 0x391   : > { %1280 = vmatmul.mubr.msk.bf16.vlgmr.msra.gmra.mrb[16].mxu1 %vm541_vm2, %v932_v40 }
 0x3d9   : > { %v644_v41 = vpop.f32.mrb[4].mxu1 }
 0x3da   : > { %v1245_v42 = vpop.f32.mrb[5].mxu1 }
 0x3db   : > { %v647_v43 = vpop.f32.mrb[6].mxu1 }
 0x3dc   : > { %v1246_v44 = vpop.f32.mrb[7].mxu1 }
 0x454   : > { %v755_v46 = vpop.f32.mrb[8].mxu1 }
 0x455   : > { %982 = vrot.lane.b32.xlu0 %v755_v46, %s1352_s13  ;;  %v1257_v47 = vpop.f32.mrb[9].mxu1 }
 0x456   : > { %v758_v48 = vpop.f32.mrb[10].mxu1 }
 0x457   : > { %v1258_v49 = vpop.f32.mrb[11].mxu1 }
 0x45c   : > { %v865_v51 = vpop.f32.mrb[12].mxu1 }
 0x45d   : > { %986 = vrot.lane.b32.xlu1 %v865_v51, %s1353_s16  ;;  %v1269_v52 = vpop.f32.mrb[13].mxu1 }
 0x45e   : > { %v868_v53 = vpop.f32.mrb[14].mxu1 }
 0x45f   : > { %v1270_v54 = vpop.f32.mrb[15].mxu1 }
 0x464   : > { %v975_v55 = vpop.f32.mrb[16].mxu1 }
 0x465   : > { %990 = vrot.lane.b32.xlu0 %v975_v55, %s1354_s18  ;;  %v1281_v1 = vpop.f32.mrb[17].mxu1 }
 0x466   : > { %v978_v56 = vpop.f32.mrb[18].mxu1 }
 0x467   : > { %v1282_v57 = vpop.f32.mrb[19].mxu1 }
 0x4c7   : > { %v983_v58 = vpop.permute.xlu0 %982 }
 0x4c8   : > { %v993_v60 = vsel %vm541_vm2, %v644_v41, %v983_v58 }
 0x4cf   : > { %v987_v59 = vpop.permute.xlu1 %986 }
 0x4d0   : > { %v995_v61 = vsel %vm994_vm4, %v993_v60, %v987_v59 }
 0x4d7   : > { %v991_v62 = vpop.permute.xlu0 %990 }
 0x4d8   : > { %v997_v63 = vsel %vm996_vm5, %v995_v61, %v991_v62 }
 0x4d9   : > { %v998_v0 = vpack.c.bf16 %v997_v63, %v997_v63 }
 0x4db   : > { %1288 = vmatmul.mubr.msk.bf16.vlgmr.msra.gmra.mrb[20].mxu0 %vm426_vm1, %v998_v0 }
 0x5ae   : > { %v1059_v3 = vpop.f32.mrb[20].mxu0 }
 0x5af   : > { %v1060_v4 = vadd.f32 %v1186_v2, %v1059_v3  ;;  %v1289_v5 = vpop.f32.mrb[21].mxu0 }
 0x5b0   : > { %v1062_v6 = vpop.f32.mrb[22].mxu0 }
 0x5b1   : > { %v1290_v8 = vpop.f32.mrb[23].mxu0  ;;  %v1065_v9 = vadd.f32 %v1060_v4, %v1455_v7  ;;  %v1190_v7 = vld [vmem:[%s1566_s8] ss:$0 sm:$0xff] }
 0x5b3   : > { %v1066_v10 = vsel %vm426_vm1, %v1065_v9, 0.0 }
 0x5b4   : > { %1067 = vadd.xlane.f32.xlu1 %v1066_v10 }
 0x641   : > { %v1068_v11 = vpop.xlane.xlu1 %1067 }
 0x642   : > { %v1070_v12 = vmul.f32 0.03125, %v1068_v11 }
 0x644   : > { %v1071_v13 = vsub.f32 %v1065_v9, %v1070_v12 }
 0x646   : > { %v1072_v14 = vmul.f32 %v1071_v13, %v1071_v13 }
 0x648   : > { %v1073_v15 = vsel %vm426_vm1, %v1072_v14, 0.0 }
 0x649   : > { %1074 = vadd.xlane.f32.xlu0 %v1073_v15 }
 0x6d6   : > { %v1075_v16 = vpop.xlane.xlu0 %1074 }
 0x6d7   : > { %v1076_v17 = vmul.f32 0.03125, %v1075_v16 }
 0x6d9   : > { %v1077_v19 = vadd.f32 1e-05, %v1076_v17 }
 0x6db   : > { %1333 = vrsqrt.f32 %v1077_v19 }
 0x6e5   : > { %v1334_v20 = vpop.eup %1333 }
 0x6e6   : > { %v1079_v21 = vmul.f32 %v1334_v20, %v1071_v13 }
 0x6e8   : > { %v1087_v23 = vmul.f32 %v1190_v7, %v1079_v21 }
 0x6ea   : > { %v1095_v24 = vadd.f32 %v1191_v22, %v1087_v23 }
 0x6ec   : > { %1096 = vst.msk [vmem:[%s398_s28] sm:$0xff] %vm426_vm1, %v1095_v24 }
 0x6ed PF: > { %s21_s17 = sadd.s32 1, %s1341_s17  }
 0x6ee   : > { %p18_p4 = scmp.ge.s32.totalorder %s21_s17, 4  }
 0x6f0   :  { %20 = sbr.rel (!%p18_p4) target bundleno = 1 (0x1), region = 97 }

// kernel: decoder_forward.8
= control target key start
LH: loop header
LB: loop body
LE: loop exit
PB: predicated region body
PF: predicated region fallthrough
CT: control target
= control target key end

     0   :  { %s1382_s13 = smov 0   ;;  %s1522_s0 = inlined_call_operand.vmem [shape: f32[2,8,32], index: 0, kind: input, shape index: {}]   ;;  %s1523_s1 = inlined_call_operand.vmem [shape: f32[2,8,32], index: 1, kind: input, shape index: {}]   ;;  %s1524_s2 = inlined_call_operand.vmem [shape: bf16[32,32], index: 2, kind: input, shape index: {}]   ;;  %s1525_s3 = inlined_call_operand.vmem [shape: f32[1,32], index: 3, kind: input, shape index: {}]   ;;  %s1526_s4 = inlined_call_operand.vmem [shape: bf16[32,64], index: 4, kind: input, shape index: {}]   ;;  %s1527_s5 = inlined_call_operand.vmem [shape: f32[1,64], index: 5, kind: input, shape index: {}]   ;;  %s1528_s6 = inlined_call_operand.vmem [shape: bf16[32,32], index: 6, kind: input, shape index: {}]   ;;  %s1529_s7 = inlined_call_operand.vmem [shape: f32[1,32], index: 7, kind: input, shape index: {}]   ;;  %s1530_s8 = inlined_call_operand.vmem [shape: f32[1,32], index: 8, kind: input, shape index: {}]   ;;  %s1531_s9 = inlined_call_operand.vmem [shape: f32[1,32], index: 9, kind: input, shape index: {}]   ;;  %s1532_s10 = inlined_call_operand.vmem [shape: f32[2,8,32], index: 10, kind: output, shape index: {}]  }
   0x1 LB: > { %s1134_s14 = sadd.s32 4294967295, %s1313_s13   ;;  %p1138_p0 = scmp.ge.s32.totalorder %s1313_s13, 1  ;;  %s1313_s13 = sphi %s1382_s13, %s20_s13  }
   0x2   : > { %p320_p1 = scmp.lt.s32.totalorder %s1313_s13, 3 }
   0x4   : > { %p321_p2 = pnand %p1138_p0, %p320_p1 }
   0x5   : > { %v1283_v0 = vld [vmem:[%s1526_s4] sm:$0xff] (!%p321_p2)   ;;  %v1315_v1 = vmov (!%p321_p2), 0.0   ;;  %v1285_v3 = vld [vmem:[%s1526_s4 + $0x8] sm:$0xff] (!%p321_p2)   ;;  %vm1316_vm0 = vmmov (!%p321_p2), 0   ;;  %p360_p3 = scmp.lt.s32.totalorder (!%p321_p2), %s1134_s14, 1  ;;  %vm399_vm1 = vcmask (!%p321_p2), 261120  }
   0x6   : > { %324 = sbr.rel (%p321_p2) target bundleno = 1771 (0x6eb), region = 60  ;;  %1199 = vmatprep.subr.bf16.mxu1 (!%p321_p2), %v1315_v1  ;;  %1191 = vmatprep.subr.bf16.mxu0 (!%p321_p2), %v1315_v1  ;;  %v1284_v2 = vld [vmem:[%s1524_s2] sm:$0xff] (!%p321_p2)   ;;  %v1286_v4 = vld [vmem:[%s1524_s2 + $0x8] sm:$0xff] (!%p321_p2)   ;;  %vm513_vm2 = vcmask (!%p321_p2), 64512   ;;  %s1317_s15 = smov (!%p321_p2), 112   ;;  %vm578_vm3 = vcmask (!%p321_p2), 1043456  }
   0x7   : > { %1200 = vmatpush3.bf16.msra.mxu1 (!%p321_p2), %v1283_v0  ;;  %1203 = vmatprep.mubr.msk.bf16.mxu1 (!%p321_p2), %vm1316_vm0, %v1315_v1  ;;  %v1146_v9 = vld [vmem:[%s1527_s5] ss:$0 sm:$0xff] (!%p321_p2)  ;;  %s1318_s16 = smov (!%p321_p2), 120   ;;  %s1319_s17 = smov (!%p321_p2), 104   ;;  %vm966_vm4 = vcmask (!%p321_p2), 130048   ;;  %vm968_vm5 = vcmask (!%p321_p2), 195584  }
   0x8   : > { %1192 = vmatpush3.bf16.msra.mxu0 (!%p321_p2), %v1284_v2  ;;  %1201 = vmatprep.subr.bf16.mxu1 (!%p321_p2), %v1315_v1  ;;  %v1142_v10 = vld [vmem:[%s1525_s3] ss:$0 sm:$0xff] (!%p321_p2)  ;;  %s1320_s18 = smov (!%p321_p2), 96   ;;  %s1321_s19 = smov (!%p321_p2), 80  }
   0x9   : > { %1193 = vmatprep.subr.bf16.mxu0 (!%p321_p2), %v1315_v1  ;;  %1195 = vmatprep.mubr.msk.bf16.mxu0 (!%p321_p2), %vm1316_vm0, %v1315_v1  ;;  %s1322_s20 = smov (!%p321_p2), 72   ;;  %s1323_s21 = smov (!%p321_p2), 88  }
   0xa   : > { %s1324_s25 = smov (!%p321_p2), 8   ;;  %s1325_s28 = smov (!%p321_p2), 16  }
   0xb   : > { %1202 = vmatpush3.bf16.msra.mxu1 (!%p321_p2), %v1285_v3 }
   0xc   : > { %1194 = vmatpush3.bf16.msra.mxu0 (!%p321_p2), %v1286_v4  ;;  %1213 = vmatprep.subr.bf16.mxu1 (!%p321_p2), %v1315_v1 }
   0xd   : > { %s1534_s14 = smov (!%p360_p3, %s1134_s14), 1  ;;  %1207 = vmatprep.subr.bf16.mxu0 %v1315_v1 }
   0xe   : > { %s1410_s23 = sshll.u32 %s1534_s14, 3 }
   0xf   : > { %s367_s26 = scalar_lea.vmem %s1523_s1, %s1410_s23  ;;  %s363_s29 = scalar_lea.vmem %s1522_s0, %s1410_s23 }
  0x10   : > { %v374_v5 = vld [vmem:[%s367_s26] sm:$0xff] }
  0x11   : > { %v444_v6 = vpack.c.bf16 %v374_v5, %v374_v5  ;;  %v1422_v7 = vld [vmem:[%s363_s29] sm:$0xff]  ;;  %s1326_s29 = smov 24  }
  0x12   : > { %v375_v8 = vpack.c.bf16 %v1422_v7, %v1422_v7 }
  0x13   : > { %1204 = vmatmul.mubr.msk.bf16.vlgmr.msra.gmra.mrb[0].mxu1 %vm399_vm1, %v444_v6 }
  0x14   : > { %1196 = vmatmul.mubr.msk.bf16.vlgmr.msra.gmra.mrb[0].mxu0 %vm399_vm1, %v375_v8  ;;  %1215 = vmatprep.mubr.msk.bf16.mxu1 %vm1316_vm0, %v1315_v1 }
  0x15   : > { %1209 = vmatprep.mubr.msk.bf16.mxu0 %vm1316_vm0, %v1315_v1 }
  0xe6   : > { %v505_v11 = vpop.f32.mrb[0].mxu1 }
  0xe7   : > { %v506_v12 = vadd.f32 %v1146_v9, %v505_v11  ;;  %v1205_v13 = vpop.f32.mrb[1].mxu1  ;;  %v437_v14 = vpop.f32.mrb[0].mxu0 }
  0xe8   : > { %v438_v15 = vadd.f32 %v1142_v10, %v437_v14  ;;  %v508_v16 = vpop.f32.mrb[2].mxu1  ;;  %v1197_v17 = vpop.f32.mrb[1].mxu0 }
  0xe9   : > { %v1438_v18 = vpack.c.bf16 %v506_v12, %v506_v12  ;;  %v1206_v19 = vpop.f32.mrb[3].mxu1  ;;  %v440_v20 = vpop.f32.mrb[2].mxu0 }
  0xea   : > { %v443_v21 = vmul.f32 0.35355338, %v438_v15  ;;  %v1198_v22 = vpop.f32.mrb[3].mxu0 }
  0xeb   : > { %735 = vrot.lane.b32.xlu1 %v1438_v18, %s1317_s15  ;;  %625 = vrot.lane.b32.xlu0 %v1438_v18, %s1318_s16  ;;  %v518_v23 = vsel %vm513_vm2, %v1438_v18, 0 }
  0xec   : > { %v511_v24 = vpack.c.bf16 %v443_v21, %v443_v21  ;;  %1208 = vmatpush3.bf16.xpose.msra.mxu0 %v518_v23 }
  0xed   : > { %1219 = vmatprep.subr.bf16.mxu0 %v1315_v1 }
  0xef   : > { %733 = vrot.lane.b32.xlu1 %v511_v24, %s1317_s15  ;;  %623 = vrot.lane.b32.xlu0 %v511_v24, %s1318_s16 }
  0xf3   : > { %843 = vrot.lane.b32.xlu1 %v511_v24, %s1319_s17  ;;  %845 = vrot.lane.b32.xlu0 %v1438_v18, %s1319_s17 }
  0xf4   : > { %1210 = vmatmul.mubr.msk.bf16.vlgmr.msra.gmra.mrb[4].mxu0 %vm513_vm2, %v511_v24 }
  0xf5   : > { %1221 = vmatprep.mubr.msk.bf16.mxu0 %vm1316_vm0, %v1315_v1 }
 0x15d   : > { %v626_v25 = vpop.permute.xlu0 %625  ;;  %v736_v27 = vpop.permute.xlu1 %735 }
 0x15e   : > { %v631_v26 = vsel %vm513_vm2, %v626_v25, 0  ;;  %v741_v29 = vsel %vm513_vm2, %v736_v27, 0 }
 0x15f   : > { %1220 = vmatpush3.bf16.xpose.msra.mxu0 %v631_v26 }
 0x160   : > { %1231 = vmatprep.subr.bf16.mxu0 %v1315_v1 }
 0x161   : > { %v624_v28 = vpop.permute.xlu0 %623  ;;  %v734_v31 = vpop.permute.xlu1 %733 }
 0x165   : > { %v846_v30 = vpop.permute.xlu0 %845  ;;  %v844_v33 = vpop.permute.xlu1 %843 }
 0x166   : > { %1222 = vmatmul.mubr.msk.bf16.vlgmr.msra.gmra.mrb[8].mxu0 %vm513_vm2, %v624_v28  ;;  %v851_v32 = vsel %vm513_vm2, %v846_v30, 0 }
 0x167   : > { %1232 = vmatpush3.bf16.xpose.msra.mxu0 %v741_v29  ;;  %1233 = vmatprep.mubr.msk.bf16.mxu0 %vm1316_vm0, %v1315_v1 }
 0x168   : > { %1243 = vmatprep.subr.bf16.mxu0 %v1315_v1 }
 0x16e   : > { %1234 = vmatmul.mubr.msk.bf16.vlgmr.msra.gmra.mrb[12].mxu0 %vm513_vm2, %v734_v31 }
 0x16f   : > { %1244 = vmatpush3.bf16.xpose.msra.mxu0 %v851_v32  ;;  %1245 = vmatprep.mubr.msk.bf16.mxu0 %vm1316_vm0, %v1315_v1 }
 0x170   : > { %1255 = vmatprep.subr.bf16.mxu0 %v1315_v1 }
 0x176   : > { %1246 = vmatmul.mubr.msk.bf16.vlgmr.msra.gmra.mrb[16].mxu0 %vm513_vm2, %v844_v33 }
 0x177   : > { %1259 = vmatprep.mubr.msk.bf16.mxu0 %vm1316_vm0, %v1315_v1 }
 0x1c7   : > { %v554_v34 = vpop.f32.mrb[4].mxu0 }
 0x1c8   : > { %v1211_v35 = vpop.f32.mrb[5].mxu0  ;;  %v560_v36 = vsel %vm513_vm2, %v554_v34, -inf }
 0x1c9   : > { %561 = vmax.xlane.f32.xlu0 %v560_v36  ;;  %v557_v37 = vpop.f32.mrb[6].mxu0 }
 0x1ca   : > { %v1212_v38 = vpop.f32.mrb[7].mxu0 }
 0x239   : > { %v667_v39 = vpop.f32.mrb[8].mxu0 }
 0x23a   : > { %v1223_v40 = vpop.f32.mrb[9].mxu0  ;;  %v673_v41 = vsel %vm513_vm2, %v667_v39, -inf }
 0x23b   : > { %674 = vmax.xlane.f32.xlu1 %v673_v41  ;;  %v670_v42 = vpop.f32.mrb[10].mxu0  ;;  %v1287_v40 = vld [vmem:[%s1528_s6] sm:$0xff]  }
 0x23c   : > { %v1224_v43 = vpop.f32.mrb[11].mxu0  ;;  %1256 = vmatpush3.bf16.msra.mxu0 %v1287_v40 }
 0x23d   : > { %1257 = vmatprep.subr.bf16.mxu0 %v1315_v1 }
 0x241   : > { %v777_v44 = vpop.f32.mrb[12].mxu0 }
 0x242   : > { %v1235_v45 = vpop.f32.mrb[13].mxu0  ;;  %v783_v46 = vsel %vm513_vm2, %v777_v44, -inf }
 0x243   : > { %784 = vmax.xlane.f32.xlu0 %v783_v46  ;;  %v780_v47 = vpop.f32.mrb[14].mxu0  ;;  %v1288_v45 = vld [vmem:[%s1528_s6 + $0x8] sm:$0xff]  }
 0x244   : > { %v1236_v48 = vpop.f32.mrb[15].mxu0  ;;  %1258 = vmatpush3.bf16.msra.mxu0 %v1288_v45 }
 0x249   : > { %v887_v49 = vpop.f32.mrb[16].mxu0 }
 0x24a   : > { %v1247_v50 = vpop.f32.mrb[17].mxu0  ;;  %v893_v51 = vsel %vm513_vm2, %v887_v49, -inf }
 0x24b   : > { %894 = vmax.xlane.f32.xlu0 %v893_v51  ;;  %v890_v52 = vpop.f32.mrb[18].mxu0 }
 0x24c   : > { %v1248_v53 = vpop.f32.mrb[19].mxu0 }
 0x256   : > { %v562_v54 = vpop.xlane.xlu0 %561 }
 0x257   : > { %v563_v55 = vsub.f32 %v554_v34, %v562_v54 }
 0x259   : > { %v564_v56 = vmul.f32 1.442695, %v563_v55 }
 0x25b   : > { %1289 = vpow2.f32 %v564_v56 }
 0x265   : > { %v1290_v57 = vpop.eup %1289 }
 0x266   : > { %v566_v58 = vsel %vm513_vm2, %v1290_v57, 0.0 }
 0x267   : > { %567 = vadd.xlane.f32.xlu1 %v566_v58 }
 0x278   : > { %573 = vrot.lane.b32.xlu1 %v1438_v18, %s1320_s18 }
 0x2c8   : > { %v675_v59 = vpop.xlane.xlu1 %674 }
 0x2c9   : > { %v676_v60 = vsub.f32 %v667_v39, %v675_v59 }
 0x2cb   : > { %v677_v61 = vmul.f32 1.442695, %v676_v60  ;;  %v1158_v60 = vld [vmem:[%s1529_s7] ss:$0 sm:$0xff] }
 0x2cd   : > { %1291 = vpow2.f32 %v677_v61 }
 0x2d0   : > { %v785_v62 = vpop.xlane.xlu0 %784 }
 0x2d1   : > { %v786_v63 = vsub.f32 %v777_v44, %v785_v62 }
 0x2d3   : > { %v787_v0 = vmul.f32 1.442695, %v786_v63 }
 0x2d5   : > { %1293 = vpow2.f32 %v787_v0 }
 0x2d7   : > { %v1292_v2 = vpop.eup %1291 }
 0x2d8   : > { %v895_v3 = vpop.xlane.xlu0 %894  ;;  %v679_v4 = vsel %vm513_vm2, %v1292_v2, 0.0 }
 0x2d9   : > { %v896_v5 = vsub.f32 %v887_v49, %v895_v3  ;;  %680 = vadd.xlane.f32.xlu0 %v679_v4 }
 0x2db   : > { %v897_v6 = vmul.f32 1.442695, %v896_v5 }
 0x2dd   : > { %1295 = vpow2.f32 %v897_v6 }
 0x2df   : > { %v1294_v8 = vpop.eup %1293 }
 0x2e0   : > { %v789_v9 = vsel %vm513_vm2, %v1294_v8, 0.0 }
 0x2e1   : > { %790 = vadd.xlane.f32.xlu1 %v789_v9 }
 0x2e7   : > { %v1296_v10 = vpop.eup %1295 }
 0x2e8   : > { %v899_v11 = vsel %vm513_vm2, %v1296_v10, 0.0 }
 0x2e9   : > { %900 = vadd.xlane.f32.xlu0 %v899_v11 }
 0x2f2   : > { %795 = vrot.lane.b32.xlu1 %v1438_v18, %s1321_s19  ;;  %s371_s19 = scalar_lea.vmem %s1532_s10, %s1410_s23 }
 0x2f4   : > { %v568_v12 = vpop.xlane.xlu1 %567 }
 0x2f5   : > { %1297 = vrcp.f32 %v568_v12 }
 0x2f6   : > { %905 = vrot.lane.b32.xlu1 %v1438_v18, %s1322_s20 }
 0x2f8   : > { %v574_v13 = vpop.permute.xlu1 %573 }
 0x2f9   : > { %v580_v14 = vsel %vm578_vm3, %v574_v13, 0 }
 0x2fa   : > { %1214 = vmatpush3.bf16.msra.mxu1 %v580_v14 }
 0x2fb   : > { %1225 = vmatprep.subr.bf16.mxu1 %v1315_v1 }
 0x2ff   : > { %v1298_v15 = vpop.eup %1297  ;;  %685 = vrot.lane.b32.xlu0 %v1438_v18, %s1323_s21 }
 0x300   : > { %v570_v16 = vmul.f32 %v1298_v15, %v1290_v57 }
 0x302   : > { %v571_v17 = vpack.c.bf16 %v570_v16, %v570_v16  ;;  %v1163_v16 = vld [vmem:[%s1531_s9] ss:$0 sm:$0xff] }
 0x304   : > { %1216 = vmatmul.mubr.msk.bf16.vlgmr.msra.gmra.mrb[4].mxu1 %vm513_vm2, %v571_v17 }
 0x305   : > { %1227 = vmatprep.mubr.msk.bf16.mxu1 %vm1316_vm0, %v1315_v1 }
 0x366   : > { %v681_v19 = vpop.xlane.xlu0 %680 }
 0x367   : > { %1299 = vrcp.f32 %v681_v19 }
 0x36e   : > { %v791_v20 = vpop.xlane.xlu1 %790 }
 0x36f   : > { %1301 = vrcp.f32 %v791_v20 }
 0x371   : > { %v1300_v21 = vpop.eup %1299 }
 0x372   : > { %v683_v23 = vmul.f32 %v1300_v21, %v1292_v2  ;;  %v796_v26 = vpop.permute.xlu1 %795 }
 0x373   : > { %v801_v28 = vsel %vm578_vm3, %v796_v26, 0 }
 0x374   : > { %v684_v18 = vpack.c.bf16 %v683_v23, %v683_v23 }
 0x376   : > { %v901_v22 = vpop.xlane.xlu0 %900  ;;  %v906_v30 = vpop.permute.xlu1 %905 }
 0x377   : > { %1303 = vrcp.f32 %v901_v22  ;;  %v911_v33 = vsel %vm578_vm3, %v906_v30, 0 }
 0x379   : > { %v1302_v27 = vpop.eup %1301 }
 0x37a   : > { %v686_v24 = vpop.permute.xlu0 %685  ;;  %v793_v29 = vmul.f32 %v1302_v27, %v1294_v8 }
 0x37b   : > { %v691_v25 = vsel %vm578_vm3, %v686_v24, 0 }
 0x37c   : > { %1226 = vmatpush3.bf16.msra.mxu1 %v691_v25  ;;  %v794_v31 = vpack.c.bf16 %v793_v29, %v793_v29 }
 0x37d   : > { %1237 = vmatprep.subr.bf16.mxu1 %v1315_v1 }
 0x37f   : > { %1228 = vmatmul.mubr.msk.bf16.vlgmr.msra.gmra.mrb[8].mxu1 %vm513_vm2, %v684_v18 }
 0x380   : > { %1238 = vmatpush3.bf16.msra.mxu1 %v801_v28  ;;  %1239 = vmatprep.mubr.msk.bf16.mxu1 %vm1316_vm0, %v1315_v1 }
 0x381   : > { %1249 = vmatprep.subr.bf16.mxu1 %v1315_v1  ;;  %v1304_v32 = vpop.eup %1303 }
 0x382   : > { %v903_v34 = vmul.f32 %v1304_v32, %v1296_v10 }
 0x384   : > { %v904_v35 = vpack.c.bf16 %v903_v34, %v903_v34 }
 0x387   : > { %1240 = vmatmul.mubr.msk.bf16.vlgmr.msra.gmra.mrb[12].mxu1 %vm513_vm2, %v794_v31 }
 0x388   : > { %1250 = vmatpush3.bf16.msra.mxu1 %v911_v33  ;;  %1251 = vmatprep.mubr.msk.bf16.mxu1 %vm1316_vm0, %v1315_v1 }
 0x38f   : > { %1252 = vmatmul.mubr.msk.bf16.vlgmr.msra.gmra.mrb[16].mxu1 %vm513_vm2, %v904_v35 }
 0x3d7   : > { %v616_v36 = vpop.f32.mrb[4].mxu1 }
 0x3d8   : > { %v1217_v37 = vpop.f32.mrb[5].mxu1 }
 0x3d9   : > { %v619_v38 = vpop.f32.mrb[6].mxu1 }
 0x3da   : > { %v1218_v39 = vpop.f32.mrb[7].mxu1 }
 0x452   : > { %v727_v41 = vpop.f32.mrb[8].mxu1 }
 0x453   : > { %954 = vrot.lane.b32.xlu0 %v727_v41, %s1324_s25  ;;  %v1229_v42 = vpop.f32.mrb[9].mxu1 }
 0x454   : > { %v730_v43 = vpop.f32.mrb[10].mxu1 }
 0x455   : > { %v1230_v44 = vpop.f32.mrb[11].mxu1 }
 0x45a   : > { %v837_v46 = vpop.f32.mrb[12].mxu1 }
 0x45b   : > { %958 = vrot.lane.b32.xlu1 %v837_v46, %s1325_s28  ;;  %v1241_v47 = vpop.f32.mrb[13].mxu1 }
 0x45c   : > { %v840_v48 = vpop.f32.mrb[14].mxu1 }
 0x45d   : > { %v1242_v49 = vpop.f32.mrb[15].mxu1 }
 0x462   : > { %v947_v50 = vpop.f32.mrb[16].mxu1 }
 0x463   : > { %962 = vrot.lane.b32.xlu0 %v947_v50, %s1326_s29  ;;  %v1253_v1 = vpop.f32.mrb[17].mxu1 }
 0x464   : > { %v950_v51 = vpop.f32.mrb[18].mxu1 }
 0x465   : > { %v1254_v52 = vpop.f32.mrb[19].mxu1 }
 0x4c5   : > { %v955_v53 = vpop.permute.xlu0 %954 }
 0x4c6   : > { %v965_v55 = vsel %vm513_vm2, %v616_v36, %v955_v53 }
 0x4cd   : > { %v959_v54 = vpop.permute.xlu1 %958 }
 0x4ce   : > { %v967_v56 = vsel %vm966_vm4, %v965_v55, %v959_v54 }
 0x4d5   : > { %v963_v57 = vpop.permute.xlu0 %962 }
 0x4d6   : > { %v969_v58 = vsel %vm968_vm5, %v967_v56, %v963_v57 }
 0x4d7   : > { %v970_v59 = vpack.c.bf16 %v969_v58, %v969_v58 }
 0x4d9   : > { %1260 = vmatmul.mubr.msk.bf16.vlgmr.msra.gmra.mrb[20].mxu0 %vm399_vm1, %v970_v59 }
 0x5ac   : > { %v1031_v61 = vpop.f32.mrb[20].mxu0 }
 0x5ad   : > { %v1032_v62 = vadd.f32 %v1158_v60, %v1031_v61  ;;  %v1261_v63 = vpop.f32.mrb[21].mxu0 }
 0x5ae   : > { %v1034_v0 = vpop.f32.mrb[22].mxu0 }
 0x5af   : > { %v1262_v2 = vpop.f32.mrb[23].mxu0  ;;  %v1037_v3 = vadd.f32 %v1032_v62, %v1422_v7  ;;  %v1162_v7 = vld [vmem:[%s1530_s8] ss:$0 sm:$0xff] }
 0x5b1   : > { %v1038_v4 = vsel %vm399_vm1, %v1037_v3, 0.0 }
 0x5b2   : > { %1039 = vadd.xlane.f32.xlu1 %v1038_v4 }
 0x63f   : > { %v1040_v5 = vpop.xlane.xlu1 %1039 }
 0x640   : > { %v1042_v6 = vmul.f32 0.03125, %v1040_v5 }
 0x642   : > { %v1043_v8 = vsub.f32 %v1037_v3, %v1042_v6 }
 0x644   : > { %v1044_v9 = vmul.f32 %v1043_v8, %v1043_v8 }
 0x646   : > { %v1045_v10 = vsel %vm399_vm1, %v1044_v9, 0.0 }
 0x647   : > { %1046 = vadd.xlane.f32.xlu0 %v1045_v10 }
 0x6d4   : > { %v1047_v11 = vpop.xlane.xlu0 %1046 }
 0x6d5   : > { %v1048_v12 = vmul.f32 0.03125, %v1047_v11 }
 0x6d7   : > { %v1049_v13 = vadd.f32 1e-05, %v1048_v12 }
 0x6d9   : > { %1305 = vrsqrt.f32 %v1049_v13 }
 0x6e3   : > { %v1306_v14 = vpop.eup %1305 }
 0x6e4   : > { %v1051_v15 = vmul.f32 %v1306_v14, %v1043_v8 }
 0x6e6   : > { %v1059_v17 = vmul.f32 %v1162_v7, %v1051_v15 }
 0x6e8   : > { %v1067_v19 = vadd.f32 %v1163_v16, %v1059_v17 }
 0x6ea   : > { %1068 = vst.msk [vmem:[%s371_s19] sm:$0xff] %vm399_vm1, %v1067_v19 }
 0x6eb PF: > { %s20_s13 = sadd.s32 1, %s1313_s13  }
 0x6ec   : > { %p17_p4 = scmp.ge.s32.totalorder %s20_s13, 4  }
 0x6ee   :  { %19 = sbr.rel (!%p17_p4) target bundleno = 1 (0x1), region = 93 }

</bundles_post_ra>
